<compile_context>
chip_gen: v6e
topology: v6e:2x2x1
jax: 0.10.0
libtpu: 0.0.40
codegen_flags: <defaults>
</compile_context>

<pallas_src>
import functools

import jax
import jax.numpy as jnp
import numpy as np
from jax.experimental import pallas as pl
from jax.experimental.pallas import tpu as pltpu


def prev_action_kernel(act_ref, table_ref, w_ref, b_ref, out_ref, *, n_cat):
    """act_ref: (tm, K) int32 global indices (category offsets already added).
    table_ref: (Vp, KEp) bf16 block-diagonal combined embedding table.
    w_ref: (KEp, Dp) bf16 fc weight.  b_ref: (1, Dp) f32.  out_ref: (tm, Dp) f32."""
    idx = act_ref[...]                                   # (tm, K) int32
    tm = idx.shape[0]
    vp = table_ref.shape[0]

    # Multi-hot over the stacked vocabularies: exactly one 1 per category per row,
    # categories occupy disjoint row ranges of the combined table.
    col = jax.lax.broadcasted_iota(jnp.int32, (tm, vp), 1)
    mh = jnp.zeros((tm, vp), jnp.float32)
    for i in range(n_cat):                               # small static loop (VPU compares)
        mh = mh + (col == idx[:, i:i + 1]).astype(jnp.float32)

    # Fused embedding lookups: multihot @ block-diag table == cat of per-category lookups.
    cat = jnp.dot(mh.astype(jnp.bfloat16), table_ref[...],
                  preferred_element_type=jnp.float32)    # (tm, KEp) f32 (values exactly bf16)

    # fc: y = cat @ W + b   (f32 accumulation on the MXU)
    out_ref[...] = (jnp.dot(cat.astype(jnp.bfloat16), w_ref[...],
                            preferred_element_type=jnp.float32) + b_ref[...])


def prev_action_embedding_forward(prev_action, tables, fc_w, fc_b, *, tm=256):
    """prev_action: (..., K) ints; tables: list of (voc_i, E) f32; fc_w: (K*E, D); fc_b: (D,).
    Returns (..., D) f32."""
    *lead, K = prev_action.shape
    assert K == len(tables)
    E = int(tables[0].shape[1])
    KE, D = fc_w.shape
    assert KE == K * E

    voc_sizes = [int(t.shape[0]) for t in tables]
    offsets = np.concatenate([[0], np.cumsum(voc_sizes)[:-1]]).astype(np.int32)
    V = int(sum(voc_sizes))

    def rup(x, m):
        return ((x + m - 1) // m) * m

    # Lane-dense padding (zeros): stacked vocab, concat dim, and output dim -> /128.
    Vp, KEp, Dp = rup(V, 128), rup(KE, 128), rup(D, 128)

    # Block-diagonal combined table: rows [off_i, off_i+voc_i) hold E_i in cols [i*E,(i+1)*E).
    table = jnp.zeros((Vp, KEp), jnp.float32)
    for i, t in enumerate(tables):
        table = table.at[int(offsets[i]):int(offsets[i]) + voc_sizes[i],
                         i * E:(i + 1) * E].set(t.astype(jnp.float32))
    w = jnp.zeros((KEp, Dp), jnp.float32).at[:KE, :D].set(fc_w.astype(jnp.float32))
    b = jnp.zeros((1, Dp), jnp.float32).at[0, :D].set(fc_b.astype(jnp.float32))

    # bf16 MXU operands (accumulation stays f32 inside the kernel).
    table = table.astype(jnp.bfloat16)
    w = w.astype(jnp.bfloat16)

    # Flatten rows, add per-category vocab offsets (global stacked-vocab indices).
    N = int(np.prod(lead)) if lead else 1
    g = prev_action.reshape(N, K).astype(jnp.int32) + jnp.asarray(offsets)[None, :]

    # >= 2 grid steps so the "parallel" axis can shard across v7x's two TensorCores;
    # padded rows compute garbage that is sliced off below.
    n_tiles = max(2, -(-N // tm))
    Np = n_tiles * tm
    g = jnp.pad(g, ((0, Np - N), (0, 0)))

    out = pl.pallas_call(
        functools.partial(prev_action_kernel, n_cat=K),
        out_shape=jax.ShapeDtypeStruct((Np, Dp), jnp.float32),
        grid=(n_tiles,),
        in_specs=[
            pl.BlockSpec((tm, K), lambda i: (i, 0)),       # per-tile indices
            pl.BlockSpec((Vp, KEp), lambda i: (0, 0)),     # grid-invariant (stays resident)
            pl.BlockSpec((KEp, Dp), lambda i: (0, 0)),
            pl.BlockSpec((1, Dp), lambda i: (0, 0)),
        ],
        out_specs=pl.BlockSpec((tm, Dp), lambda i: (i, 0)),  # lane-dense (Dp % 128 == 0)
        compiler_params=pltpu.CompilerParams(dimension_semantics=("parallel",)),
    )(g, table, w, b)

    return out[:N, :D].reshape(*lead, D)


# ----------------------------- plain-JAX f32 reference (torch semantics) ------------------------

def reference_forward(prev_action, tables, fc_w, fc_b):
    embs = [tables[i][prev_action[..., i]] for i in range(len(tables))]
    cat = jnp.concatenate(embs, axis=-1)
    return cat @ fc_w + fc_b


if __name__ == "__main__":
    key = jax.random.PRNGKey(0)
    action_space = [3, 4, 5, 6]          # K = 4 categorical sub-actions
    output_dim = 32
    B, T = 2, 8
    K = len(action_space)
    E = output_dim // K

    keys = jax.random.split(key, K + 3)
    # nn.Embedding default init: N(0, 1); nn.Linear default: U(+-1/sqrt(fan_in))
    tables = [jax.random.normal(keys[i], (action_space[i], E), jnp.float32) for i in range(K)]
    bound = 1.0 / np.sqrt(K * E)
    fc_w = jax.random.uniform(keys[K], (K * E, output_dim), jnp.float32, -bound, bound)
    fc_b = jax.random.uniform(keys[K + 1], (output_dim,), jnp.float32, -bound, bound)

    pa_cols = [jax.random.randint(jax.random.fold_in(keys[K + 2], i), (B, T, 1), 0, action_space[i])
               for i in range(K)]
    prev_action = jnp.concatenate(pa_cols, axis=-1).astype(jnp.int32)     # (B, T, K)

    out = prev_action_embedding_forward(prev_action, tables, fc_w, fc_b)
    out = jax.block_until_ready(out)
    assert out.shape == (B, T, output_dim) and out.dtype == jnp.float32

    ref = reference_forward(prev_action, tables, fc_w, fc_b)
    np.testing.assert_allclose(np.asarray(out), np.asarray(ref), rtol=2e-2, atol=2e-2)
    print("KERNEL_OK")
</pallas_src>

<mosaic_0001>
module attributes {stable_mosaic.version = 11 : i64} {
  func.func @prev_action_kernel(%arg0: i32, %arg1: memref<256x4xi32, #tpu.memory_space<vmem>>, %arg2: memref<128x128xbf16, #tpu.memory_space<vmem>>, %arg3: memref<128x128xbf16, #tpu.memory_space<vmem>>, %arg4: memref<1x128xf32, #tpu.memory_space<vmem>>, %arg5: memref<256x128xf32, #tpu.memory_space<vmem>>) attributes {dimension_semantics = [#tpu.dimension_semantics<parallel>], iteration_bounds = array<i64: 2>, scalar_prefetch = 0 : i64, scratch_operands = 0 : i64, tpu.core_type = #tpu.core_type<tc>, window_params = [{transform_indices = @transform_0, window_bounds = array<i64: 256, 4>}, {pipeline_mode = #tpu.pipeline_mode<synchronous>, transform_indices = @transform_1, window_bounds = array<i64: 128, 128>}, {pipeline_mode = #tpu.pipeline_mode<synchronous>, transform_indices = @transform_2, window_bounds = array<i64: 128, 128>}, {pipeline_mode = #tpu.pipeline_mode<synchronous>, transform_indices = @transform_3, window_bounds = array<i64: 1, 128>}, {transform_indices = @transform_4, window_bounds = array<i64: 256, 128>}]} {
    %c0 = arith.constant 0 : index
    %c0_0 = arith.constant 0 : index
    %0 = vector.load %arg1[%c0, %c0_0] : memref<256x4xi32, #tpu.memory_space<vmem>>, vector<256x4xi32>
    %1 = tpu.iota {dimensions = array<i32: 1>} : vector<256x128xi32>
    %cst = arith.constant 0.000000e+00 : f32
    %2 = vector.broadcast %cst : f32 to vector<256x128xf32>
    %3 = vector.extract_strided_slice %0 {offsets = [0, 0], sizes = [256, 1], strides = [1, 1]} : vector<256x4xi32> to vector<256x1xi32>
    %4 = vector.broadcast %3 : vector<256x1xi32> to vector<256x128xi32>
    %5 = arith.cmpi eq, %1, %4 : vector<256x128xi32>
    %6 = arith.extui %5 : vector<256x128xi1> to vector<256x128xi32>
    %7 = arith.sitofp %6 : vector<256x128xi32> to vector<256x128xf32>
    %8 = arith.addf %2, %7 : vector<256x128xf32>
    %9 = vector.extract_strided_slice %0 {offsets = [0, 1], sizes = [256, 1], strides = [1, 1]} : vector<256x4xi32> to vector<256x1xi32>
    %10 = vector.broadcast %9 : vector<256x1xi32> to vector<256x128xi32>
    %11 = arith.cmpi eq, %1, %10 : vector<256x128xi32>
    %12 = arith.extui %11 : vector<256x128xi1> to vector<256x128xi32>
    %13 = arith.sitofp %12 : vector<256x128xi32> to vector<256x128xf32>
    %14 = arith.addf %8, %13 : vector<256x128xf32>
    %15 = vector.extract_strided_slice %0 {offsets = [0, 2], sizes = [256, 1], strides = [1, 1]} : vector<256x4xi32> to vector<256x1xi32>
    %16 = vector.broadcast %15 : vector<256x1xi32> to vector<256x128xi32>
    %17 = arith.cmpi eq, %1, %16 : vector<256x128xi32>
    %18 = arith.extui %17 : vector<256x128xi1> to vector<256x128xi32>
    %19 = arith.sitofp %18 : vector<256x128xi32> to vector<256x128xf32>
    %20 = arith.addf %14, %19 : vector<256x128xf32>
    %21 = vector.extract_strided_slice %0 {offsets = [0, 3], sizes = [256, 1], strides = [1, 1]} : vector<256x4xi32> to vector<256x1xi32>
    %22 = vector.broadcast %21 : vector<256x1xi32> to vector<256x128xi32>
    %23 = arith.cmpi eq, %1, %22 : vector<256x128xi32>
    %24 = arith.extui %23 : vector<256x128xi1> to vector<256x128xi32>
    %25 = arith.sitofp %24 : vector<256x128xi32> to vector<256x128xf32>
    %26 = arith.addf %20, %25 : vector<256x128xf32>
    %27 = arith.truncf %26 : vector<256x128xf32> to vector<256x128xbf16>
    %c0_1 = arith.constant 0 : index
    %c0_2 = arith.constant 0 : index
    %28 = vector.load %arg2[%c0_1, %c0_2] : memref<128x128xbf16, #tpu.memory_space<vmem>>, vector<128x128xbf16>
    %cst_3 = arith.constant dense<0.000000e+00> : vector<256x128xf32>
    %29 = tpu.matmul %27, %28, %cst_3 {dimension_numbers = #tpu.dot_dimension_numbers<[1], [0], [0], [1], [0, 0, 1, 1], [], []>} : vector<256x128xbf16>, vector<128x128xbf16>, vector<256x128xf32> -> vector<256x128xf32>
    %30 = arith.truncf %29 : vector<256x128xf32> to vector<256x128xbf16>
    %c0_4 = arith.constant 0 : index
    %c0_5 = arith.constant 0 : index
    %31 = vector.load %arg3[%c0_4, %c0_5] : memref<128x128xbf16, #tpu.memory_space<vmem>>, vector<128x128xbf16>
    %cst_6 = arith.constant dense<0.000000e+00> : vector<256x128xf32>
    %32 = tpu.matmul %30, %31, %cst_6 {dimension_numbers = #tpu.dot_dimension_numbers<[1], [0], [0], [1], [0, 0, 1, 1], [], []>} : vector<256x128xbf16>, vector<128x128xbf16>, vector<256x128xf32> -> vector<256x128xf32>
    %c0_7 = arith.constant 0 : index
    %c0_8 = arith.constant 0 : index
    %33 = vector.load %arg4[%c0_7, %c0_8] : memref<1x128xf32, #tpu.memory_space<vmem>>, vector<1x128xf32>
    %34 = vector.broadcast %33 : vector<1x128xf32> to vector<256x128xf32>
    %35 = arith.addf %32, %34 : vector<256x128xf32>
    %c0_9 = arith.constant 0 : index
    %c0_10 = arith.constant 0 : index
    %36 = vector.load %arg5[%c0_9, %c0_10] : memref<256x128xf32, #tpu.memory_space<vmem>>, vector<256x128xf32>
    tpu.vector_store %arg5[%c0_9, %c0_10], %35 {strides = array<i32>} : memref<256x128xf32, #tpu.memory_space<vmem>>, vector<256x128xf32>,
    return
  }
  func.func @transform_0(%arg0: i32) -> (i32, i32) {
    %c0_i32 = arith.constant 0 : i32
    %c0_i32_0 = arith.constant 0 : i32
    return %arg0, %c0_i32 : i32, i32
  }
  func.func @transform_1(%arg0: i32) -> (i32, i32) {
    %c0_i32 = arith.constant 0 : i32
    %c0_i32_0 = arith.constant 0 : i32
    %c0_i32_1 = arith.constant 0 : i32
    return %c0_i32, %c0_i32_0 : i32, i32
  }
  func.func @transform_2(%arg0: i32) -> (i32, i32) {
    %c0_i32 = arith.constant 0 : i32
    %c0_i32_0 = arith.constant 0 : i32
    %c0_i32_1 = arith.constant 0 : i32
    return %c0_i32, %c0_i32_0 : i32, i32
  }
  func.func @transform_3(%arg0: i32) -> (i32, i32) {
    %c0_i32 = arith.constant 0 : i32
    %c0_i32_0 = arith.constant 0 : i32
    %c0_i32_1 = arith.constant 0 : i32
    return %c0_i32, %c0_i32_0 : i32, i32
  }
  func.func @transform_4(%arg0: i32) -> (i32, i32) {
    %c0_i32 = arith.constant 0 : i32
    %c0_i32_0 = arith.constant 0 : i32
    return %arg0, %c0_i32 : i32, i32
  }
}

</mosaic_0001>

<bundles_post_ra>
// kernel: tpu_custom_call.1
= control target key start
LH: loop header
LB: loop body
LE: loop exit
PB: predicated region body
PF: predicated region fallthrough
CT: control target
= control target key end

     0   :  { %9 = vsyncpa [#allocation3], 0  ;;  %s3180_s0 = inlined_call_operand.vmem [shape: s32[512,4], index: 0, kind: input, shape index: {}]   ;;  %s3181_s1 = inlined_call_operand.vmem [shape: bf16[128,128], index: 1, kind: input, shape index: {}]   ;;  %s3182_s2 = inlined_call_operand.vmem [shape: bf16[128,128], index: 2, kind: input, shape index: {}]   ;;  %s3183_s3 = inlined_call_operand.vmem [shape: f32[1,128], index: 3, kind: input, shape index: {}]   ;;  %s3184_s4 = inlined_call_operand.hbm [shape: f32[512,128], index: 4, kind: output, shape index: {}]  }
   0x1   :  { %11 = vsyncpa [#allocation3 + $0x1], 0  ;;  %s2239_s15 = smov 0   ;;  %s2241_s16 = smov 0  }
   0x2   :  { %s2243_s17 = smov 0   ;;  %s2245_s18 = smov 0  }
   0x3 LB: > { %s2260_s19 = sadd.s32 4294967295, %s2204_s18   ;;  %s1727_s20 = sadd.s32 4294967294, %s2204_s18   ;;  %s2204_s18 = sphi %s2245_s18, %s3217_s18   ;;  %s2200_s17 = sphi %s2243_s17, %s3216_s17   ;;  %s2196_s16 = sphi %s2241_s16, %s3215_s16   ;;  %s2192_s15 = sphi %s2239_s15, %s3214_s15  }
   0x4   : > { %s2264_s21 = sadd.s32 1, %s2204_s18   ;;  %s113_s22 = sadd.s32 1, %s2200_s17 }
   0x5   : > { %s110_s23 = ssub.s32 %s2204_s18, %s2264_s21  ;;  %p123_p0 = scmp.ne.s32.totalorder %s2200_s17, %s2196_s16 }
   0x6   : > { %p111_p1 = scmp.eq.s32.totalorder %s110_s23, 0  ;;  %p124_p2 = scmp.eq.s32.totalorder %s2260_s19, 1 }
   0x7   : > { %p129_p3 = scmp.ne.s32.totalorder %s2196_s16, %s2192_s15  ;;  %p130_p4 = scmp.eq.s32.totalorder %s1727_s20, 1 }
   0x8   : > { %s2275_s24 = scalar_select %p111_p1, %s2200_s17, %s113_s22  }
   0x9   : > { %p2277_p5 = por %p124_p2, %p123_p0  ;;  %p2281_p6 = por %p130_p4, %p129_p3 }
   0xa   : > { %p1730_p7 = scmp.ge.s32.totalorder %s2204_s18, 1  ;;  %p166_p8 = scmp.lt.s32.totalorder %s2204_s18, 3 }
   0xc   : > { %p167_p9 = pnand %p1730_p7, %p166_p8 }
   0xe   : > { %170 = sbr.rel (%p167_p9) target bundleno = 931 (0x3a3), region = 36 }
  0x13   : > { %s1732_s27 = sshll.u32 %s2260_s19, 5  ;;  %v3193_v0 = vmov 1   ;;  %v3191_v1 = vmov 0   ;;  %v3189_v9 = vmov 2   ;;  %v3185_v13 = vmov 3   ;;  %v2126_v26 = vld [vmem:[%s3181_s1 + $0x38] sm:$0xff]  }
  0x14   : > { %2076 = vset.pattern.permute.xlu1 %v3193_v0  ;;  %2075 = vset.pattern.permute.xlu0 %v3191_v1  ;;  %p193_p10 = scmp.lt.s32.totalorder %s1732_s27, 63  ;;  %v2127_v27 = vld [vmem:[%s3181_s1 + $0x30] sm:$0xff]   ;;  %v2128_v28 = vld [vmem:[%s3181_s1 + $0x28] sm:$0xff]   ;;  %v2129_v29 = vld [vmem:[%s3181_s1 + $0x20] sm:$0xff]   ;;  %s1884_s10 = sshll.u32 %s2260_s19, 12 }
  0x15   : > { %1933 = vmatprep.subr.bf16.mxu0 %v2126_v26  ;;  %v2130_v32 = vld [vmem:[%s3181_s1 + $0x18] sm:$0xff]   ;;  %v2131_v35 = vld [vmem:[%s3181_s1 + $0x10] sm:$0xff]   ;;  %v2132_v38 = vld [vmem:[%s3181_s1 + $0x8] sm:$0xff]   ;;  %s3131_s14 = scalar_lea.hbm %s3184_s4, %s1884_s10  ;;  %s2211_s22 = smov [#allocation2]  }
  0x16   : > { %s3219_s27 = smov (!%p193_p10, %s1732_s27), 63  ;;  %1934 = vmatpush3.bf16.msra.mxu0 %v2126_v26  ;;  %v2133_v41 = vld [vmem:[%s3181_s1] sm:$0xff]   ;;  %s2148_s23 = sshll.u32 %s2211_s22, 4  ;;  %s2149_s23 = int_to_ptr.vmem [resolvable:$false] %s2148_s23 }
  0x17   : > { %s1733_s28 = sshll.u32 %s3219_s27, 3  ;;  %1935 = vmatprep.subr.bf16.mxu0 %v2127_v27  ;;  %s2150_s27 = scalar_lea.vmem %s2149_s23, 8192 }
  0x18   : > { %s2293_s5 = scalar_lea.vmem %s3180_s0, %s1733_s28 }
  0x19   : > { %v2296_v2 = vld [vmem:[%s2293_s5] sm:$0xff]  ;;  %v2301_v3 = vld [vmem:[%s2293_s5 + $0x8] sm:$0xff]  ;;  %v202_v4 = vld [vmem:[%s2293_s5 + $0x10] sm:$0xff] }
  0x1a   : > { %459 = vperm.xlu1 %2076, %v2296_v2   ;;  %235 = vperm.xlu0 %2075, %v2296_v2   ;;  %v2307_v5 = vld [vmem:[%s2293_s5 + $0x18] sm:$0xff]  ;;  %v2310_v6 = vld [vmem:[%s2293_s5 + $0x28] sm:$0xff]  ;;  %v206_v7 = vld [vmem:[%s2293_s5 + $0x30] sm:$0xff] }
  0x1b   : > { %v2319_v8 = vld [vmem:[%s2293_s5 + $0x48] sm:$0xff]  ;;  %v2325_v10 = vld [vmem:[%s2293_s5 + $0x50] sm:$0xff]  ;;  %v2347_v16 = vld [vmem:[%s2293_s5 + $0x20] sm:$0xff]  ;;  %1936 = vmatpush3.bf16.msra.mxu0 %v2127_v27 }
  0x1c   : > { %v2329_v11 = vld [vmem:[%s2293_s5 + $0x68] sm:$0xff]  ;;  %v2334_v12 = vld [vmem:[%s2293_s5 + $0x70] sm:$0xff]  ;;  %v2368_v20 = vld [vmem:[%s2293_s5 + $0x38] sm:$0xff]  ;;  %1937 = vmatprep.subr.bf16.mxu0 %v2128_v28 }
  0x1d   : > { %v2340_v14 = vld [vmem:[%s2293_s5 + $0x88] sm:$0xff]  ;;  %v2344_v15 = vld [vmem:[%s2293_s5 + $0x90] sm:$0xff]  ;;  %v2392_v24 = vld [vmem:[%s2293_s5 + $0x40] sm:$0xff] }
  0x1e   : > { %462 = vperm.xlu1 %2076, %v2301_v3   ;;  %238 = vperm.xlu0 %2075, %v2301_v3   ;;  %v2353_v17 = vld [vmem:[%s2293_s5 + $0xa8] sm:$0xff]  ;;  %v2358_v18 = vld [vmem:[%s2293_s5 + $0xb0] sm:$0xff]  ;;  %v2403_v25 = vld [vmem:[%s2293_s5 + $0x58] sm:$0xff] }
  0x1f   : > { %v2363_v19 = vld [vmem:[%s2293_s5 + $0xc8] sm:$0xff]  ;;  %v2371_v21 = vld [vmem:[%s2293_s5 + $0xd0] sm:$0xff]  ;;  %1938 = vmatpush3.bf16.msra.mxu0 %v2128_v28  ;;  %v212_v36 = vld [vmem:[%s2293_s5 + $0x60] sm:$0xff] }
  0x20   : > { %v2377_v22 = vld [vmem:[%s2293_s5 + $0xe8] sm:$0xff]  ;;  %v230_v23 = vld [vmem:[%s2293_s5 + $0xf0] sm:$0xff]  ;;  %1939 = vmatprep.subr.bf16.mxu0 %v2129_v29  ;;  %v215_v46 = vld [vmem:[%s2293_s5 + $0x78] sm:$0xff] }
  0x21   : > { %v2508_v57 = vld [vmem:[%s2293_s5 + $0x80] sm:$0xff]  ;;  %v2518_v60 = vld [vmem:[%s2293_s5 + $0x98] sm:$0xff] }
  0x22   : > { %2077 = vset.pattern.permute.xlu1 %v3191_v1  ;;  %241 = vperm.xlu0 %2075, %v202_v4   ;;  %v2527_v63 = vld [vmem:[%s2293_s5 + $0xa0] sm:$0xff]  ;;  %v2574_v28 = vld [vmem:[%s2293_s5 + $0xf8] sm:$0xff] }
  0x23   : > { %244 = vperm.xlu1 %2077, %v2307_v5   ;;  %1940 = vmatpush3.bf16.msra.mxu0 %v2129_v29 }
  0x24   : > { %1941 = vmatprep.subr.bf16.mxu0 %v2130_v32 }
  0x26   : > { %250 = vperm.xlu0 %2075, %v2310_v6  }
  0x27   : > { %2078 = vset.pattern.permute.xlu1 %v3193_v0  ;;  %1942 = vmatpush3.bf16.msra.mxu0 %v2130_v32 }
  0x28   : > { %468 = vperm.xlu1 %2078, %v2307_v5   ;;  %1943 = vmatprep.subr.bf16.mxu0 %v2131_v35 }
  0x2a   : > { %253 = vperm.xlu0 %2075, %v206_v7  }
  0x2b   : > { %1944 = vmatpush3.bf16.msra.mxu0 %v2131_v35 }
  0x2c   : > { %2079 = vset.pattern.permute.xlu1 %v3189_v9  ;;  %1945 = vmatprep.subr.bf16.mxu0 %v2132_v38 }
  0x2d   : > { %683 = vperm.xlu1 %2079, %v2296_v2  }
  0x2e   : > { %262 = vperm.xlu0 %2075, %v2319_v8  }
  0x2f   : > { %1946 = vmatpush3.bf16.msra.mxu0 %v2132_v38 }
  0x30   : > { %1947 = vmatprep.subr.bf16.mxu0 %v2133_v41 }
  0x31   : > { %689 = vperm.xlu1 %2079, %v202_v4  }
  0x32   : > { %265 = vperm.xlu0 %2075, %v2325_v10  }
  0x33   : > { %1948 = vmatpush3.bf16.msra.mxu0 %v2133_v41 }
  0x35   : > { %692 = vperm.xlu1 %2079, %v2307_v5  }
  0x36   : > { %274 = vperm.xlu0 %2075, %v2329_v11  }
  0x39   : > { %2080 = vset.pattern.permute.xlu1 %v3185_v13 }
  0x3a   : > { %910 = vperm.xlu1 %2080, %v2301_v3   ;;  %277 = vperm.xlu0 %2075, %v2334_v12  }
  0x3e   : > { %913 = vperm.xlu1 %2080, %v202_v4   ;;  %286 = vperm.xlu0 %2075, %v2340_v14  }
  0x42   : > { %2081 = vset.pattern.permute.xlu1 %v3191_v1  ;;  %289 = vperm.xlu0 %2075, %v2344_v15  }
  0x43   : > { %247 = vperm.xlu1 %2081, %v2347_v16  }
  0x46   : > { %298 = vperm.xlu0 %2075, %v2353_v17  }
  0x47   : > { %2082 = vset.pattern.permute.xlu1 %v3193_v0 }
  0x48   : > { %471 = vperm.xlu1 %2082, %v2347_v16  }
  0x4a   : > { %301 = vperm.xlu0 %2075, %v2358_v18  }
  0x4c   : > { %474 = vperm.xlu1 %2082, %v2310_v6  }
  0x4e   : > { %310 = vperm.xlu0 %2075, %v2363_v19  }
  0x50   : > { %2083 = vset.pattern.permute.xlu1 %v3191_v1 }
  0x51   : > { %256 = vperm.xlu1 %2083, %v2368_v20  }
  0x52   : > { %313 = vperm.xlu0 %2075, %v2371_v21  }
  0x55   : > { %2084 = vset.pattern.permute.xlu1 %v3193_v0 }
  0x56   : > { %480 = vperm.xlu1 %2084, %v2368_v20   ;;  %322 = vperm.xlu0 %2075, %v2377_v22  }
  0x5a   : > { %2085 = vset.pattern.permute.xlu1 %v3189_v9  ;;  %325 = vperm.xlu0 %2075, %v230_v23  }
  0x5b   : > { %695 = vperm.xlu1 %2085, %v2347_v16  }
  0x5e   : > { %2119 = vset.pattern.permute.xlu0 %v3193_v0 }
  0x5f   : > { %701 = vperm.xlu1 %2085, %v206_v7   ;;  %465 = vperm.xlu0 %2119, %v202_v4   ;;  %v2536_v4 = vld [vmem:[%s2293_s5 + $0xb8] sm:$0xff] }
  0x63   : > { %704 = vperm.xlu1 %2085, %v2368_v20   ;;  %477 = vperm.xlu0 %2119, %v206_v7  }
  0x67   : > { %2086 = vset.pattern.permute.xlu1 %v3185_v13  ;;  %489 = vperm.xlu0 %2119, %v2325_v10  }
  0x68   : > { %922 = vperm.xlu1 %2086, %v2310_v6  }
  0x6b   : > { %501 = vperm.xlu0 %2119, %v2334_v12  }
  0x6c   : > { %925 = vperm.xlu1 %2086, %v206_v7   ;;  %v232_v7 = vlaneseq }
  0x6f   : > { %513 = vperm.xlu0 %2119, %v2344_v15  }
  0x70   : > { %2087 = vset.pattern.permute.xlu1 %v3191_v1 }
  0x71   : > { %259 = vperm.xlu1 %2087, %v2392_v24  }
  0x73   : > { %525 = vperm.xlu0 %2119, %v2358_v18  }
  0x75   : > { %2088 = vset.pattern.permute.xlu1 %v3193_v0 }
  0x76   : > { %483 = vperm.xlu1 %2088, %v2392_v24  }
  0x77   : > { %537 = vperm.xlu0 %2119, %v2371_v21  }
  0x7a   : > { %486 = vperm.xlu1 %2088, %v2319_v8  }
  0x7b   : > { %549 = vperm.xlu0 %2119, %v230_v23   ;;  %v2564_v23 = vld [vmem:[%s2293_s5 + $0xe0] sm:$0xff] }
  0x7e   : > { %2089 = vset.pattern.permute.xlu1 %v3191_v1 }
  0x7f   : > { %268 = vperm.xlu1 %2089, %v2403_v25   ;;  %2121 = vset.pattern.permute.xlu0 %v3189_v9 }
  0x80   : > { %686 = vperm.xlu0 %2121, %v2301_v3  }
  0x83   : > { %2090 = vset.pattern.permute.xlu1 %v3193_v0 }
  0x84   : > { %492 = vperm.xlu1 %2090, %v2403_v25   ;;  %698 = vperm.xlu0 %2121, %v2310_v6   ;;  %v2543_v6 = vld [vmem:[%s2293_s5 + $0xc0] sm:$0xff] }
  0x88   : > { %2091 = vset.pattern.permute.xlu1 %v3189_v9  ;;  %710 = vperm.xlu0 %2121, %v2319_v8  }
  0x89   : > { %707 = vperm.xlu1 %2091, %v2392_v24  }
  0x8c   : > { %722 = vperm.xlu0 %2121, %v2329_v11  }
  0x8d   : > { %713 = vperm.xlu1 %2091, %v2325_v10  }
  0x90   : > { %734 = vperm.xlu0 %2121, %v2340_v14  }
  0x91   : > { %716 = vperm.xlu1 %2091, %v2403_v25  }
  0x94   : > { %746 = vperm.xlu0 %2121, %v2353_v17  }
  0x95   : > { %2092 = vset.pattern.permute.xlu1 %v3185_v13  ;;  %v2433_v30 = vpop.permute.xlu1 %459  ;;  %v2435_v31 = vpop.permute.xlu0 %235 }
  0x96   : > { %934 = vperm.xlu1 %2092, %v2319_v8  }
  0x98   : > { %758 = vperm.xlu0 %2121, %v2363_v19  }
  0x99   : > { %v2442_v33 = vpop.permute.xlu1 %462  ;;  %v2444_v34 = vpop.permute.xlu0 %238 }
  0x9a   : > { %937 = vperm.xlu1 %2092, %v2325_v10  }
  0x9c   : > { %770 = vperm.xlu0 %2121, %v2377_v22  }
  0x9d   : > { %v2452_v37 = vpop.permute.xlu0 %241 }
  0x9e   : > { %2093 = vset.pattern.permute.xlu1 %v3191_v1  ;;  %v2458_v39 = vpop.permute.xlu1 %244 }
  0x9f   : > { %271 = vperm.xlu1 %2093, %v212_v36  }
  0xa0   : > { %2124 = vset.pattern.permute.xlu0 %v3185_v13 }
  0xa1   : > { %907 = vperm.xlu0 %2124, %v2296_v2   ;;  %v2462_v40 = vpop.permute.xlu0 %250 }
  0xa3   : > { %2094 = vset.pattern.permute.xlu1 %v3193_v0  ;;  %v2468_v42 = vpop.permute.xlu1 %468 }
  0xa4   : > { %495 = vperm.xlu1 %2094, %v212_v36  }
  0xa5   : > { %916 = vperm.xlu0 %2124, %v2307_v5   ;;  %v2471_v43 = vpop.permute.xlu0 %253 }
  0xa8   : > { %498 = vperm.xlu1 %2094, %v2329_v11   ;;  %v2474_v44 = vpop.permute.xlu1 %683 }
  0xa9   : > { %919 = vperm.xlu0 %2124, %v2347_v16   ;;  %v2477_v45 = vpop.permute.xlu0 %262 }
  0xac   : > { %2095 = vset.pattern.permute.xlu1 %v3191_v1  ;;  %v2481_v47 = vpop.permute.xlu1 %689 }
  0xad   : > { %280 = vperm.xlu1 %2095, %v215_v46   ;;  %928 = vperm.xlu0 %2124, %v2368_v20   ;;  %v2484_v48 = vpop.permute.xlu0 %265 }
  0xb0   : > { %v2486_v49 = vpop.permute.xlu1 %692 }
  0xb1   : > { %2096 = vset.pattern.permute.xlu1 %v3193_v0  ;;  %931 = vperm.xlu0 %2124, %v2392_v24   ;;  %v2490_v50 = vpop.permute.xlu0 %274  ;;  %v3187_v24 = vmov 0.0  }
  0xb2   : > { %504 = vperm.xlu1 %2096, %v215_v46  }
  0xb5   : > { %v2492_v51 = vpop.permute.xlu1 %910  ;;  %940 = vperm.xlu0 %2124, %v2403_v25   ;;  %v2495_v52 = vpop.permute.xlu0 %277 }
  0xb6   : > { %2097 = vset.pattern.permute.xlu1 %v3189_v9 }
  0xb7   : > { %719 = vperm.xlu1 %2097, %v212_v36  }
  0xb9   : > { %v2498_v53 = vpop.permute.xlu1 %913  ;;  %943 = vperm.xlu0 %2124, %v212_v36   ;;  %v2500_v54 = vpop.permute.xlu0 %286 }
  0xbb   : > { %725 = vperm.xlu1 %2097, %v2334_v12  }
  0xbd   : > { %v2503_v55 = vpop.permute.xlu0 %289  ;;  %952 = vperm.xlu0 %2124, %v215_v46  }
  0xbe   : > { %v2505_v56 = vpop.permute.xlu1 %247 }
  0xbf   : > { %728 = vperm.xlu1 %2097, %v215_v46  }
  0xc1   : > { %v2510_v58 = vpop.permute.xlu0 %298  ;;  %955 = vperm.xlu0 %2124, %v2508_v57  }
  0xc3   : > { %2098 = vset.pattern.permute.xlu1 %v3185_v13  ;;  %v2514_v59 = vpop.permute.xlu1 %471 }
  0xc4   : > { %946 = vperm.xlu1 %2098, %v2329_v11   ;;  %v2553_v11 = vld [vmem:[%s2293_s5 + $0xd8] sm:$0xff] }
  0xc5   : > { %v2520_v61 = vpop.permute.xlu0 %301  ;;  %964 = vperm.xlu0 %2124, %v2518_v60  }
  0xc7   : > { %v2523_v62 = vpop.permute.xlu1 %474 }
  0xc8   : > { %949 = vperm.xlu1 %2098, %v2334_v12   ;;  %v2555_v12 = vand.u32 127, %v232_v7 }
  0xc9   : > { %v2529_v2 = vpop.permute.xlu0 %310  ;;  %967 = vperm.xlu0 %2124, %v2527_v63  }
  0xca   : > { %3197 = vst [vmem:[#allocation5_spill] sm:$0xff] %v2529_v2  ;;  %vm332_vm0 = vcmp.eq.s32.totalorder %v2555_v12, %v2452_v37  ;;  %vm336_vm1 = vcmp.eq.s32.totalorder %v2555_v12, %v2471_v43  ;;  %vm340_vm3 = vcmp.eq.s32.totalorder %v2555_v12, %v2484_v48  ;;  %vm344_vm5 = vcmp.eq.s32.totalorder %v2555_v12, %v2495_v52 }
  0xcb   : > { %v1736_v25 = vsel %vm332_vm0, 1.0, %v3187_v24  ;;  %v1740_v35 = vsel %vm336_vm1, 1.0, %v3187_v24  ;;  %v1744_v43 = vsel %vm340_vm3, 1.0, %v3187_v24  ;;  %vm348_vm7 = vcmp.eq.s32.totalorder %v2555_v12, %v2503_v55 }
  0xcc   : > { %2099 = vset.pattern.permute.xlu1 %v3191_v1  ;;  %v2533_v3 = vpop.permute.xlu1 %256  ;;  %vm352_vm9 = vcmp.eq.s32.totalorder %v2555_v12, %v2520_v61  ;;  %vm554_vm0 = vcmp.eq.s32.totalorder %v2555_v12, %v2433_v30  ;;  %vm330_vm1 = vcmp.eq.s32.totalorder %v2555_v12, %v2435_v31  ;;  %vm331_vm3 = vcmp.eq.s32.totalorder %v2555_v12, %v2444_v34 }
  0xcd   : > { %283 = vperm.xlu1 %2099, %v2508_v57   ;;  %v2539_v5 = vpop.permute.xlu0 %313  ;;  %976 = vperm.xlu0 %2124, %v2536_v4  }
  0xce   : > { %vm356_vm11 = vcmp.eq.s32.totalorder %v2555_v12, %v2539_v5 }
  0xd1   : > { %2100 = vset.pattern.permute.xlu1 %v3193_v0  ;;  %v2546_v8 = vpop.permute.xlu1 %480  ;;  %v2548_v10 = vpop.permute.xlu0 %322  ;;  %979 = vperm.xlu0 %2124, %v2543_v6  }
  0xd2   : > { %3198 = vst [vmem:[#allocation6_spill] sm:$0xff] %v2548_v10  ;;  %507 = vperm.xlu1 %2100, %v2508_v57  }
  0xd5   : > { %v2557_v16 = vpop.permute.xlu0 %325  ;;  %988 = vperm.xlu0 %2124, %v2553_v11  }
  0xd6   : > { %510 = vperm.xlu1 %2100, %v2340_v14   ;;  %v2561_v20 = vpop.permute.xlu1 %695  ;;  %vm360_vm13 = vcmp.eq.s32.totalorder %v2555_v12, %v2557_v16 }
  0xd9   : > { %991 = vperm.xlu0 %2124, %v2564_v23  }
  0xda   : > { %2101 = vset.pattern.permute.xlu1 %v3191_v1  ;;  %v2571_v26 = vpop.permute.xlu1 %701  ;;  %v466_v27 = vpop.permute.xlu0 %465 }
  0xdb   : > { %vm556_vm2 = vcmp.eq.s32.totalorder %v2555_v12, %v466_v27  ;;  %292 = vperm.xlu1 %2101, %v2518_v60   ;;  %v1748_v27 = vsel %vm344_vm5, 1.0, %v3187_v24  ;;  %vm333_vm5 = vcmp.eq.s32.totalorder %v2555_v12, %v2458_v39 }
  0xdc   : > { %v1768_v29 = vsel %vm556_vm2, 1.0, %v3187_v24  ;;  %vm555_vm2 = vcmp.eq.s32.totalorder %v2555_v12, %v2442_v33 }
  0xdd   : > { %v2581_v32 = vadd.f32 %v1768_v29, %v1736_v25  ;;  %1000 = vperm.xlu0 %2124, %v2574_v28  }
  0xde   : > { %v2585_v36 = vpop.permute.xlu1 %704  ;;  %v478_v37 = vpop.permute.xlu0 %477 }
  0xdf   : > { %vm560_vm4 = vcmp.eq.s32.totalorder %v2555_v12, %v478_v37  ;;  %2102 = vset.pattern.permute.xlu1 %v3193_v0 }
  0xe0   : > { %v1772_v38 = vsel %vm560_vm4, 1.0, %v3187_v24  ;;  %516 = vperm.xlu1 %2102, %v2518_v60   ;;  %vm557_vm4 = vcmp.eq.s32.totalorder %v2555_v12, %v2468_v42 }
  0xe1   : > { %v2593_v41 = vadd.f32 %v1772_v38, %v1740_v35  ;;  %v1752_v38 = vsel %vm348_vm7, 1.0, %v3187_v24  ;;  %vm335_vm7 = vcmp.eq.s32.totalorder %v2555_v12, %v2462_v40 }
  0xe2   : > { %v490_v46 = vpop.permute.xlu0 %489 }
  0xe3   : > { %v2598_v7 = vpop.permute.xlu1 %922  ;;  %vm564_vm6 = vcmp.eq.s32.totalorder %v2555_v12, %v490_v46 }
  0xe4   : > { %v1776_v48 = vsel %vm564_vm6, 1.0, %v3187_v24  ;;  %2103 = vset.pattern.permute.xlu1 %v3189_v9  ;;  %vm778_vm6 = vcmp.eq.s32.totalorder %v2555_v12, %v2474_v44 }
  0xe5   : > { %v2603_v25 = vadd.f32 %v1776_v48, %v1744_v43  ;;  %731 = vperm.xlu1 %2103, %v2508_v57   ;;  %v1756_v48 = vsel %vm352_vm9, 1.0, %v3187_v24 }
  0xe6   : > { %v502_v29 = vpop.permute.xlu0 %501 }
  0xe7   : > { %v2609_v35 = vpop.permute.xlu1 %925  ;;  %vm568_vm8 = vcmp.eq.s32.totalorder %v2555_v12, %v502_v29 }
  0xe8   : > { %v1780_v52 = vsel %vm568_vm8, 1.0, %v3187_v24  ;;  %vm781_vm8 = vcmp.eq.s32.totalorder %v2555_v12, %v2486_v49 }
  0xe9   : > { %v2613_v37 = vadd.f32 %v1780_v52, %v1748_v27  ;;  %737 = vperm.xlu1 %2103, %v2344_v15  }
  0xea   : > { %v514_v43 = vpop.permute.xlu0 %513 }
  0xeb   : > { %vm572_vm10 = vcmp.eq.s32.totalorder %v2555_v12, %v514_v43 }
  0xec   : > { %v1784_v55 = vsel %vm572_vm10, 1.0, %v3187_v24  ;;  %v2621_v57 = vpop.permute.xlu1 %259  ;;  %vm339_vm10 = vcmp.eq.s32.totalorder %v2555_v12, %v2477_v45 }
  0xed   : > { %v2623_v46 = vadd.f32 %v1784_v55, %v1752_v38  ;;  %740 = vperm.xlu1 %2103, %v2518_v60   ;;  %v1760_v38 = vsel %vm356_vm11, 1.0, %v3187_v24  ;;  %vm780_vm11 = vcmp.eq.s32.totalorder %v2555_v12, %v2481_v47 }
  0xee   : > { %v526_v27 = vpop.permute.xlu0 %525 }
  0xef   : > { %vm576_vm12 = vcmp.eq.s32.totalorder %v2555_v12, %v526_v27 }
  0xf0   : > { %v1788_v61 = vsel %vm576_vm12, 1.0, %v3187_v24  ;;  %vm1003_vm12 = vcmp.eq.s32.totalorder %v2555_v12, %v2492_v51 }
  0xf1   : > { %v2631_v29 = vadd.f32 %v1788_v61, %v1756_v48  ;;  %2104 = vset.pattern.permute.xlu1 %v3185_v13  ;;  %v2634_v52 = vpop.permute.xlu1 %483  ;;  %v1764_v48 = vsel %vm360_vm13, 1.0, %v3187_v24  ;;  %vm1004_vm13 = vcmp.eq.s32.totalorder %v2555_v12, %v2498_v53 }
  0xf2   : > { %958 = vperm.xlu1 %2104, %v2340_v14   ;;  %v538_v60 = vpop.permute.xlu0 %537 }
  0xf3   : > { %vm580_vm14 = vcmp.eq.s32.totalorder %v2555_v12, %v538_v60 }
  0xf4   : > { %v1792_v5 = vsel %vm580_vm14, 1.0, %v3187_v24  ;;  %vm558_vm14 = vcmp.eq.s32.totalorder %v2555_v12, %v2514_v59 }
  0xf5   : > { %v2642_v43 = vadd.f32 %v1792_v5, %v1760_v38  ;;  %v2644_v55 = vpop.permute.xlu1 %486 }
  0xf6   : > { %961 = vperm.xlu1 %2104, %v2344_v15   ;;  %v550_v27 = vpop.permute.xlu0 %549 }
  0xf7   : > { %3199 = vst [vmem:[#allocation7_spill] sm:$0xff] %v2642_v43  ;;  %vm584_vm15 = vcmp.eq.s32.totalorder %v2555_v12, %v550_v27 }
  0xf8   : > { %v1796_v14 = vsel %vm584_vm15, 1.0, %v3187_v24  ;;  %vm559_vm15 = vcmp.eq.s32.totalorder %v2555_v12, %v2523_v62 }
  0xf9   : > { %v2650_v61 = vadd.f32 %v1796_v14, %v1764_v48 }
  0xfa   : > { %2105 = vset.pattern.permute.xlu1 %v3191_v1  ;;  %v2653_v16 = vpop.permute.xlu1 %268 }
  0xfb   : > { %3200 = vst [vmem:[#allocation8_spill] sm:$0xff] %v2650_v61  ;;  %295 = vperm.xlu1 %2105, %v2527_v63   ;;  %v687_v38 = vpop.permute.xlu0 %686  ;;  %v3201_v61 = vmov 2  }
  0xfc   : > { %vm779_vm9 = vcmp.eq.s32.totalorder %v2555_v12, %v687_v38 }
  0xff   : > { %2106 = vset.pattern.permute.xlu1 %v3193_v0  ;;  %v2657_v60 = vpop.permute.xlu1 %492  ;;  %v2659_v5 = vpop.permute.xlu0 %698 }
 0x100   : > { %519 = vperm.xlu1 %2106, %v2527_v63  }
 0x103   : > { %v2662_v15 = vpop.permute.xlu0 %710 }
 0x104   : > { %522 = vperm.xlu1 %2106, %v2353_v17   ;;  %v2665_v48 = vpop.permute.xlu1 %707 }
 0x107   : > { %v2667_v27 = vpop.permute.xlu0 %722 }
 0x108   : > { %2107 = vset.pattern.permute.xlu1 %v3191_v1  ;;  %v2670_v14 = vpop.permute.xlu1 %713 }
 0x109   : > { %304 = vperm.xlu1 %2107, %v2536_v4  }
 0x10b   : > { %v2673_v13 = vpop.permute.xlu0 %734 }
 0x10c   : > { %v2675_v24 = vpop.permute.xlu1 %716 }
 0x10d   : > { %2108 = vset.pattern.permute.xlu1 %v3193_v0  ;;  %v3202_v0 = vmov 0.0  }
 0x10e   : > { %528 = vperm.xlu1 %2108, %v2536_v4   ;;  %v1766_v10 = vsel %vm554_vm0, 1.0, %v3202_v0  ;;  %v1734_v43 = vsel %vm330_vm1, 1.0, %v3202_v0  ;;  %v1767_v31 = vsel %vm555_vm2, 1.0, %v3202_v0  ;;  %v1735_v33 = vsel %vm331_vm3, 1.0, %v3202_v0 }
 0x10f   : > { %v2679_v9 = vpop.permute.xlu0 %746  ;;  %v650_v42 = vadd.f32 %v1766_v10, %v1734_v43  ;;  %v1737_v2 = vsel %vm333_vm5, 1.0, %v3202_v0  ;;  %v1798_v39 = vsel %vm778_vm6, 1.0, %v3202_v0  ;;  %v1739_v44 = vsel %vm335_vm7, 1.0, %v3202_v0 }
 0x110   : > { %v1801_v49 = vsel %vm781_vm8, 1.0, %v3202_v0  ;;  %v1799_v10 = vsel %vm779_vm9, 1.0, %v3202_v0  ;;  %v2732_v38 = vsel %vm339_vm10, 1.0, %v3202_v0  ;;  %vm561_vm0 = vcmp.eq.s32.totalorder %v2555_v12, %v2546_v8 }
 0x111   : > { %v2689_v1 = vpop.permute.xlu1 %934  ;;  %v874_v45 = vadd.f32 %v1798_v39, %v650_v42  ;;  %v1800_v51 = vsel %vm780_vm11, 1.0, %v3202_v0  ;;  %vm334_vm1 = vcmp.eq.s32.totalorder %v2555_v12, %v2505_v56  ;;  %v1831_v59 = vsel %vm1003_vm12, 1.0, %v3202_v0 }
 0x112   : > { %2109 = vset.pattern.permute.xlu1 %v3201_v61  ;;  %v1770_v62 = vsel %vm558_vm14, 1.0, %v3202_v0  ;;  %vm337_vm2 = vcmp.eq.s32.totalorder %v2555_v12, %v2533_v3  ;;  %v1773_v42 = vsel %vm561_vm0, 1.0, %v3202_v0  ;;  %vm783_vm3 = vcmp.eq.s32.totalorder %v2555_v12, %v2659_v5 }
 0x113   : > { %743 = vperm.xlu1 %2109, %v2527_v63   ;;  %v2697_v30 = vpop.permute.xlu0 %758  ;;  %v1769_v63 = vsel %vm557_vm4, 1.0, %v3202_v0  ;;  %v1738_v56 = vsel %vm334_vm1, 1.0, %v3202_v0  ;;  %vm782_vm5 = vcmp.eq.s32.totalorder %v2555_v12, %v2561_v20  ;;  %v1741_v3 = vsel %vm337_vm2, 1.0, %v3202_v0 }
 0x114   : > { %3203 = vst [vmem:[#allocation9_spill] sm:$0xff] %v2697_v30  ;;  %v651_v30 = vadd.f32 %v1767_v31, %v1735_v33  ;;  %v653_v43 = vadd.f32 %v1769_v63, %v1737_v2  ;;  %v1832_v31 = vsel %vm1004_vm13, 1.0, %v3202_v0  ;;  %v1771_v33 = vsel %vm559_vm15, 1.0, %v3202_v0 }
 0x115   : > { %v2710_v34 = vpop.permute.xlu1 %937  ;;  %vm784_vm6 = vcmp.eq.s32.totalorder %v2555_v12, %v2571_v26  ;;  %v3205_v63 = vmov 3   ;;  %v1803_v20 = vsel %vm783_vm3, 1.0, %v3202_v0  ;;  %vm785_vm7 = vcmp.eq.s32.totalorder %v2555_v12, %v2585_v36 }
 0x116   : > { %v877_v2 = vadd.f32 %v1801_v49, %v653_v43  ;;  %v875_v53 = vadd.f32 %v1799_v10, %v651_v30  ;;  %v654_v10 = vadd.f32 %v1770_v62, %v1738_v56  ;;  %v655_v43 = vadd.f32 %v1771_v33, %v1739_v44 }
 0x117   : > { %749 = vperm.xlu1 %2109, %v2358_v18   ;;  %v2718_v40 = vpop.permute.xlu0 %770  ;;  %vm1008_vm9 = vcmp.eq.s32.totalorder %v2555_v12, %v2609_v35  ;;  %vm1007_vm10 = vcmp.eq.s32.totalorder %v2555_v12, %v2598_v7  ;;  %vm562_vm11 = vcmp.eq.s32.totalorder %v2555_v12, %v2634_v52  ;;  %v1805_v62 = vsel %vm785_vm7, 1.0, %v3202_v0 }
 0x118   : > { %3204 = vst [vmem:[#allocation10_spill] sm:$0xff] %v2718_v40  ;;  %v1099_v49 = vadd.f32 %v1831_v59, %v875_v53  ;;  %v1804_v40 = vsel %vm784_vm6, 1.0, %v3202_v0  ;;  %vm563_vm12 = vcmp.eq.s32.totalorder %v2555_v12, %v2644_v55  ;;  %vm338_vm13 = vcmp.eq.s32.totalorder %v2555_v12, %v2621_v57 }
 0x119   : > { %v880_v33 = vadd.f32 %v1804_v40, %v2593_v41  ;;  %v1774_v41 = vsel %vm562_vm11, 1.0, %v3202_v0  ;;  %vm787_vm15 = vcmp.eq.s32.totalorder %v2555_v12, %v2662_v15  ;;  %v1775_v57 = vsel %vm563_vm12, 1.0, %v3202_v0 }
 0x11a   : > { %v2738_v47 = vpop.permute.xlu1 %271  ;;  %vm786_vm0 = vcmp.eq.s32.totalorder %v2555_v12, %v2665_v48  ;;  %vm565_vm1 = vcmp.eq.s32.totalorder %v2555_v12, %v2657_v60  ;;  %v3206_v52 = vmov 0   ;;  %vm1011_vm2 = vcmp.eq.s32.totalorder %v2555_v12, %v2689_v1 }
 0x11b   : > { %752 = vperm.xlu1 %2109, %v2536_v4   ;;  %v876_v4 = vadd.f32 %v1800_v51, %v2581_v32  ;;  %v1802_v51 = vsel %vm782_vm5, 1.0, %v3202_v0  ;;  %vm788_vm5 = vcmp.eq.s32.totalorder %v2555_v12, %v2670_v14  ;;  %vm789_vm6 = vcmp.eq.s32.totalorder %v2555_v12, %v2675_v24 }
 0x11c   : > { %v908_v8 = vpop.permute.xlu0 %907  ;;  %v878_v59 = vadd.f32 %v1802_v51, %v654_v10  ;;  %v659_v10 = vadd.f32 %v1775_v57, %v2732_v38  ;;  %v1777_v38 = vsel %vm565_vm1, 1.0, %v3202_v0  ;;  %vm1012_vm7 = vcmp.eq.s32.totalorder %v2555_v12, %v2710_v34 }
 0x11d   : > { %vm1002_vm4 = vcmp.eq.s32.totalorder %v2555_v12, %v908_v8  ;;  %v657_v8 = vadd.f32 %v1773_v42, %v1741_v3  ;;  %v1835_v42 = vsel %vm1007_vm10, 1.0, %v3202_v0  ;;  %v1807_v3 = vsel %vm787_vm15, 1.0, %v3202_v0 }
 0x11e   : > { %v1830_v30 = vsel %vm1002_vm4, 1.0, %v3202_v0  ;;  %vm341_vm4 = vcmp.eq.s32.totalorder %v2555_v12, %v2653_v16  ;;  %v883_v48 = vadd.f32 %v1807_v3, %v659_v10  ;;  %v3207_v16 = vmov 1  }
 0x11f   : > { %2110 = vset.pattern.permute.xlu1 %v3205_v63  ;;  %v2763_v39 = vpop.permute.xlu1 %495  ;;  %v1098_v5 = vadd.f32 %v1830_v30, %v874_v45  ;;  %v1100_v45 = vadd.f32 %v1832_v31, %v876_v4  ;;  %v1836_v31 = vsel %vm1008_vm9, 1.0, %v3202_v0  ;;  %v881_v7 = vadd.f32 %v1805_v62, %v657_v8 }
 0x120   : > { %970 = vperm.xlu1 %2110, %v2353_v17   ;;  %v917_v32 = vpop.permute.xlu0 %916  ;;  %v879_v17 = vadd.f32 %v1803_v20, %v655_v43  ;;  %v1104_v56 = vadd.f32 %v1836_v31, %v880_v33  ;;  %v1742_v4 = vsel %vm338_vm13, 1.0, %v3202_v0  ;;  %v1806_v43 = vsel %vm786_vm0, 1.0, %v3202_v0 }
 0x121   : > { %vm1005_vm8 = vcmp.eq.s32.totalorder %v2555_v12, %v917_v32  ;;  %v1130_v26 = vpack.c.bf16 %v1099_v49, %v1098_v5  ;;  %v658_v49 = vadd.f32 %v1774_v41, %v1742_v4  ;;  %v1839_v20 = vsel %vm1011_vm2, 1.0, %v3202_v0 }
 0x122   : > { %v1833_v44 = vsel %vm1005_vm8, 1.0, %v3202_v0  ;;  %v1103_v55 = vadd.f32 %v1835_v42, %v879_v17  ;;  %v1809_v60 = vsel %vm789_vm6, 1.0, %v3202_v0  ;;  %v1840_v34 = vsel %vm1012_vm7, 1.0, %v3202_v0 }
 0x123   : > { %v1101_v53 = vadd.f32 %v1833_v44, %v877_v2  ;;  %v2779_v36 = vpop.permute.xlu1 %498  ;;  %1949 = vmatprep.mubr.bf16.mxu0 %v1130_v26  ;;  %v882_v51 = vadd.f32 %v1806_v43, %v658_v49  ;;  %v1745_v26 = vsel %vm341_vm4, 1.0, %v3202_v0  ;;  %v1808_v44 = vsel %vm788_vm5, 1.0, %v3202_v0 }
 0x124   : > { %973 = vperm.xlu1 %2110, %v2358_v18   ;;  %v920_v35 = vpop.permute.xlu0 %919  ;;  %v661_v17 = vadd.f32 %v1777_v38, %v1745_v26  ;;  %v884_v33 = vadd.f32 %v1808_v44, %v2603_v25  ;;  %vm566_vm10 = vcmp.eq.s32.totalorder %v2555_v12, %v2763_v39  ;;  %vm343_vm11 = vcmp.eq.s32.totalorder %v2555_v12, %v2490_v50 }
 0x125   : > { %vm1006_vm14 = vcmp.eq.s32.totalorder %v2555_v12, %v920_v35  ;;  %v1131_v2 = vpack.c.bf16 %v1101_v53, %v1100_v45  ;;  %v1107_v53 = vadd.f32 %v1839_v20, %v883_v48  ;;  %vm567_vm12 = vcmp.eq.s32.totalorder %v2555_v12, %v2779_v36 }
 0x126   : > { %v1834_v18 = vsel %vm1006_vm14, 1.0, %v3202_v0  ;;  %v885_v35 = vadd.f32 %v1809_v60, %v661_v17  ;;  %v1108_v41 = vadd.f32 %v1840_v34, %v884_v33  ;;  %vm342_vm13 = vcmp.eq.s32.totalorder %v2555_v12, %v2738_v47 }
 0x127   : > { %v1102_v40 = vadd.f32 %v1834_v18, %v878_v59  ;;  %1950 = vmatmul.mubr.bf16.vlgmr.msra.gmra.mxu0 %v1131_v2  ;;  %v1747_v39 = vsel %vm343_vm11, 1.0, %v3202_v0  ;;  %v1779_v50 = vsel %vm567_vm12, 1.0, %v3202_v0  ;;  %vm791_vm15 = vcmp.eq.s32.totalorder %v2555_v12, %v2667_v27 }
 0x128   : > { %2111 = vset.pattern.permute.xlu1 %v3206_v52  ;;  %v2808_v15 = vpop.permute.xlu1 %280  ;;  %v929_v30 = vpop.permute.xlu0 %928  ;;  %v1746_v36 = vsel %vm342_vm13, 1.0, %v3202_v0  ;;  %v663_v4 = vadd.f32 %v1779_v50, %v1747_v39  ;;  %v1811_v27 = vsel %vm791_vm15, 1.0, %v3202_v0 }
 0x129   : > { %vm1009_vm3 = vcmp.eq.s32.totalorder %v2555_v12, %v929_v30  ;;  %307 = vperm.xlu1 %2111, %v2543_v6   ;;  %v1132_v5 = vpack.c.bf16 %v1103_v55, %v1102_v40  ;;  %v1778_v55 = vsel %vm566_vm10, 1.0, %v3202_v0  ;;  %vm345_vm1 = vcmp.eq.s32.totalorder %v2555_v12, %v2808_v15 }
 0x12a   : > { %v1837_v8 = vsel %vm1009_vm3, 1.0, %v3202_v0  ;;  %v1749_v49 = vsel %vm345_vm1, 1.0, %v3202_v0 }
 0x12b   : > { %v1105_v1 = vadd.f32 %v1837_v8, %v881_v7  ;;  %1953 = vmatprep.mubr.bf16.mxu0 %v1132_v5  ;;  %v662_v7 = vadd.f32 %v1778_v55, %v1746_v36  ;;  %v2140_v55 = vld [vmem:[%s3182_s2 + $0x8] sm:$0xff]  }
 0x12c   : > { %v932_v32 = vpop.permute.xlu0 %931 }
 0x12d   : > { %vm1010_vm8 = vcmp.eq.s32.totalorder %v2555_v12, %v932_v32  ;;  %2112 = vset.pattern.permute.xlu1 %v3207_v16  ;;  %v505_v24 = vpop.permute.xlu1 %504  ;;  %v1133_v14 = vpack.c.bf16 %v1105_v1, %v1104_v56  ;;  %v887_v1 = vadd.f32 %v1811_v27, %v663_v4 }
 0x12e   : > { %v1838_v45 = vsel %vm1010_vm8, 1.0, %v3202_v0  ;;  %531 = vperm.xlu1 %2112, %v2543_v6   ;;  %vm569_vm0 = vcmp.eq.s32.totalorder %v2555_v12, %v505_v24  ;;  %vm347_vm8 = vcmp.eq.s32.totalorder %v2555_v12, %v2500_v54  ;;  %v2135_v54 = vld [vmem:[%s3182_s2 + $0x30] sm:$0xff]  }
 0x12f   : > { %v1106_v59 = vadd.f32 %v1838_v45, %v882_v51  ;;  %1954 = vmatmul.mubr.bf16.gmra.mxu0 %v1133_v14  ;;  %v1781_v30 = vsel %vm569_vm0, 1.0, %v3202_v0 }
 0x130   : > { %v941_v62 = vpop.permute.xlu0 %940  ;;  %v665_v8 = vadd.f32 %v1781_v30, %v1749_v49 }
 0x131   : > { %vm1013_vm9 = vcmp.eq.s32.totalorder %v2555_v12, %v941_v62  ;;  %v1134_v31 = vpack.c.bf16 %v1107_v53, %v1106_v59 }
 0x132   : > { %v1841_v2 = vsel %vm1013_vm9, 1.0, %v3202_v0  ;;  %534 = vperm.xlu1 %2112, %v2363_v19   ;;  %v720_v42 = vpop.permute.xlu1 %719  ;;  %vm795_vm9 = vcmp.eq.s32.totalorder %v2555_v12, %v2673_v13 }
 0x133   : > { %v1109_v18 = vadd.f32 %v1841_v2, %v885_v35  ;;  %1957 = vmatprep.mubr.bf16.mxu0 %v1134_v31  ;;  %vm790_vm14 = vcmp.eq.s32.totalorder %v2555_v12, %v720_v42  ;;  %v2137_v2 = vld [vmem:[%s3182_s2 + $0x20] sm:$0xff]   ;;  %v2138_v42 = vld [vmem:[%s3182_s2 + $0x18] sm:$0xff]  }
 0x134   : > { %v944_v40 = vpop.permute.xlu0 %943  ;;  %v1810_v56 = vsel %vm790_vm14, 1.0, %v3202_v0 }
 0x135   : > { %v1135_v57 = vpack.c.bf16 %v1109_v18, %v1108_v41  ;;  %vm1014_vm2 = vcmp.eq.s32.totalorder %v2555_v12, %v944_v40  ;;  %v886_v5 = vadd.f32 %v1810_v56, %v662_v7  ;;  %v2139_v18 = vld [vmem:[%s3182_s2 + $0x10] sm:$0xff]   ;;  %v2141_v7 = vld [vmem:[%s3182_s2] sm:$0xff]  }
 0x136   : > { %2113 = vset.pattern.permute.xlu1 %v3206_v52  ;;  %v726_v25 = vpop.permute.xlu1 %725  ;;  %v1842_v10 = vsel %vm1014_vm2, 1.0, %v3202_v0 }
 0x137   : > { %316 = vperm.xlu1 %2113, %v2553_v11   ;;  %1958 = vmatmul.mubr.bf16.gmra.mxu0 %v1135_v57  ;;  %vm792_vm4 = vcmp.eq.s32.totalorder %v2555_v12, %v726_v25  ;;  %v1110_v20 = vadd.f32 %v1842_v10, %v886_v5 }
 0x138   : > { %v953_v3 = vpop.permute.xlu0 %952  ;;  %v1812_v38 = vsel %vm792_vm4, 1.0, %v3202_v0 }
 0x139   : > { %vm1017_vm5 = vcmp.eq.s32.totalorder %v2555_v12, %v953_v3  ;;  %v888_v26 = vadd.f32 %v1812_v38, %v2613_v37  ;;  %v2134_v37 = vld [vmem:[%s3182_s2 + $0x38] sm:$0xff]  }
 0x13a   : > { %v729_v47 = vpop.permute.xlu1 %728  ;;  %v1845_v24 = vsel %vm1017_vm5, 1.0, %v3202_v0  ;;  %1981 = vmatprep.subr.bf16.mxu1 %v2134_v37 }
 0x13b   : > { %2114 = vset.pattern.permute.xlu1 %v3207_v16  ;;  %vm793_vm3 = vcmp.eq.s32.totalorder %v2555_v12, %v729_v47  ;;  %1982 = vmatpush3.bf16.msra.mxu1 %v2134_v37 }
 0x13c   : > { %540 = vperm.xlu1 %2114, %v2553_v11   ;;  %v1813_v15 = vsel %vm793_vm3, 1.0, %v3202_v0  ;;  %1983 = vmatprep.subr.bf16.mxu1 %v2135_v54 }
 0x13d   : > { %v889_v32 = vadd.f32 %v1813_v15, %v665_v8 }
 0x13f   : > { %v947_v43 = vpop.permute.xlu1 %946  ;;  %v1113_v45 = vadd.f32 %v1845_v24, %v889_v32  ;;  %1984 = vmatpush3.bf16.msra.mxu1 %v2135_v54 }
 0x140   : > { %vm1015_vm6 = vcmp.eq.s32.totalorder %v2555_v12, %v947_v43  ;;  %2115 = vset.pattern.permute.xlu1 %v3201_v61 }
 0x141   : > { %v1843_v48 = vsel %vm1015_vm6, 1.0, %v3202_v0  ;;  %755 = vperm.xlu1 %2115, %v2543_v6   ;;  %vm351_vm6 = vcmp.eq.s32.totalorder %v2555_v12, %v2510_v58 }
 0x142   : > { %v1111_v51 = vadd.f32 %v1843_v48, %v887_v1 }
 0x143   : > { %v950_v14 = vpop.permute.xlu1 %949 }
 0x144   : > { %vm1016_vm7 = vcmp.eq.s32.totalorder %v2555_v12, %v950_v14  ;;  %v1136_v44 = vpack.c.bf16 %v1111_v51, %v1110_v20  ;;  %v2142_v20 = vld [vmem:[%s2293_s5 + $0xf0] sm:$0xff] }
 0x145   : > { %v1844_v60 = vsel %vm1016_vm7, 1.0, %v3202_v0  ;;  %761 = vperm.xlu1 %2115, %v2371_v21   ;;  %vm799_vm7 = vcmp.eq.s32.totalorder %v2555_v12, %v2679_v9 }
 0x146   : > { %v1112_v17 = vadd.f32 %v1844_v60, %v888_v26  ;;  %1961 = vmatprep.mubr.bf16.mxu0 %v1136_v44  ;;  %v2143_v26 = vld [vmem:[%s2293_s5 + $0xe8] sm:$0xff]  ;;  %v1755_v44 = vsel %vm351_vm6, 1.0, %v3202_v0  ;;  %s189_s5 = sand.u32 1, %s2196_s16  }
 0x147   : > { %s1731_s6 = sshll.u32 %s189_s5, 8  ;;  %s3140_s19 = scalar_lea.sflag [#allocation3], %s189_s5 }
 0x148   : > { %v284_v53 = vpop.permute.xlu1 %283  ;;  %v1137_v6 = vpack.c.bf16 %v1113_v45, %v1112_v17  ;;  %s3064_s9 = scalar_lea.vmem [#allocation2], %s1731_s6 }
 0x149   : > { %764 = vperm.xlu1 %2115, %v2553_v11   ;;  %v1751_v11 = vsel %vm347_vm8, 1.0, %v3202_v0  ;;  %vm346_vm12 = vcmp.eq.s32.totalorder %v2555_v12, %v284_v53  ;;  %s1665_s11 = sshll.u32 %s3064_s9, 4  ;;  %s3133_s11 = int_to_ptr.vmem [resolvable:$true] %s1665_s11 }
 0x14a   : > { %1962 = vmatmul.mubr.bf16.gmra.mxu0 %v1137_v6  ;;  %s2144_s20 = scalar_lea.vmem %s3133_s11, 4096  ;;  %p2151_p0 = scmp.lt.s32.totalorder %s3133_s11, %s2149_s23 }
 0x14b   : > { %p2145_p11 = scmp.ne.s32.totalorder %s3133_s11, %s2144_s20  ;;  %p2152_p1 = scmp.lt.s32.totalorder %s2150_s27, %s2144_s20 }
 0x14d   : > { %2116 = vset.pattern.permute.xlu1 %v3205_v63  ;;  %v508_v59 = vpop.permute.xlu1 %507  ;;  %p2146_p12 = pnand %p2145_p11, %p2277_p5  ;;  %p2153_p2 = por %p2152_p1, %p2151_p0 }
 0x14e   : > { %982 = vperm.xlu1 %2116, %v2363_v19   ;;  %v1815_v19 = vsel %vm795_vm9, 1.0, %v3202_v0  ;;  %vm570_vm11 = vcmp.eq.s32.totalorder %v2555_v12, %v508_v59 }
 0x14f   : > { %v1782_v25 = vsel %vm570_vm11, 1.0, %v3202_v0  ;;  %p2147_p13 = pneg %p2146_p12 }
 0x151   : > { %v511_v34 = vpop.permute.xlu1 %510  ;;  %p2154_p3 = pnand %p2153_p2, %p2147_p13 }
 0x152   : > { %vm571_vm10 = vcmp.eq.s32.totalorder %v2555_v12, %v511_v34  ;;  %985 = vperm.xlu1 %2116, %v2371_v21   ;;  %v2136_v21 = vld [vmem:[%s3182_s2 + $0x28] sm:$0xff]  }
 0x153   : > { %v1783_v62 = vsel %vm571_vm10, 1.0, %v3202_v0  ;;  %1985 = vmatprep.subr.bf16.mxu1 %v2136_v21 }
 0x154   : > { %v667_v33 = vadd.f32 %v1783_v62, %v1751_v11  ;;  %1986 = vmatpush3.bf16.msra.mxu1 %v2136_v21 }
 0x155   : > { %1987 = vmatprep.subr.bf16.mxu1 %v2137_v2 }
 0x156   : > { %2117 = vset.pattern.permute.xlu1 %v3206_v52  ;;  %v293_v13 = vpop.permute.xlu1 %292  ;;  %v891_v35 = vadd.f32 %v1815_v19, %v667_v33 }
 0x157   : > { %319 = vperm.xlu1 %2117, %v2564_v23   ;;  %vm349_vm0 = vcmp.eq.s32.totalorder %v2555_v12, %v293_v13 }
 0x158   : > { %1988 = vmatpush3.bf16.msra.mxu1 %v2137_v2 }
 0x159   : > { %1989 = vmatprep.subr.bf16.mxu1 %v2138_v42 }
 0x15b   : > { %2118 = vset.pattern.permute.xlu1 %v3207_v16  ;;  %v517_v31 = vpop.permute.xlu1 %516 }
 0x15c   : > { %543 = vperm.xlu1 %2118, %v2564_v23   ;;  %1990 = vmatpush3.bf16.msra.mxu1 %v2138_v42  ;;  %vm573_vm14 = vcmp.eq.s32.totalorder %v2555_v12, %v517_v31 }
 0x15d   : > { %1991 = vmatprep.subr.bf16.mxu1 %v2139_v18  ;;  %v1785_v36 = vsel %vm573_vm14, 1.0, %v3202_v0 }
 0x160   : > { %546 = vperm.xlu1 %2118, %v2377_v22   ;;  %v732_v41 = vpop.permute.xlu1 %731  ;;  %v956_v22 = vpop.permute.xlu0 %955  ;;  %1992 = vmatpush3.bf16.msra.mxu1 %v2139_v18 }
 0x161   : > { %vm794_vm13 = vcmp.eq.s32.totalorder %v2555_v12, %v732_v41  ;;  %vm1018_vm15 = vcmp.eq.s32.totalorder %v2555_v12, %v956_v22  ;;  %1993 = vmatprep.subr.bf16.mxu1 %v2140_v55 }
 0x162   : > { %v1814_v50 = vsel %vm794_vm13, 1.0, %v3202_v0  ;;  %v1846_v4 = vsel %vm1018_vm15, 1.0, %v3202_v0 }
 0x164   : > { %2120 = vset.pattern.permute.xlu1 %v3206_v52  ;;  %v738_v57 = vpop.permute.xlu1 %737  ;;  %v1750_v52 = vsel %vm346_vm12, 1.0, %v3202_v0  ;;  %1994 = vmatpush3.bf16.msra.mxu1 %v2140_v55  ;;  %v965_v47 = vpop.permute.xlu0 %964 }
 0x165   : > { %328 = vperm.xlu1 %2120, %v2574_v28   ;;  %v666_v40 = vadd.f32 %v1782_v25, %v1750_v52  ;;  %vm796_vm2 = vcmp.eq.s32.totalorder %v2555_v12, %v738_v57  ;;  %1995 = vmatprep.subr.bf16.mxu1 %v2141_v7  ;;  %vm1021_vm3 = vcmp.eq.s32.totalorder %v2555_v12, %v965_v47 }
 0x166   : > { %v1816_v5 = vsel %vm796_vm2, 1.0, %v3202_v0  ;;  %v1849_v8 = vsel %vm1021_vm3, 1.0, %v3202_v0 }
 0x167   : > { %v890_v56 = vadd.f32 %v1814_v50, %v666_v40  ;;  %v892_v38 = vadd.f32 %v1816_v5, %v2623_v46 }
 0x168   : > { %v741_v39 = vpop.permute.xlu1 %740  ;;  %1996 = vmatpush3.bf16.msra.mxu1 %v2141_v7  ;;  %v968_v59 = vpop.permute.xlu0 %967 }
 0x169   : > { %2122 = vset.pattern.permute.xlu1 %v3207_v16  ;;  %vm797_vm1 = vcmp.eq.s32.totalorder %v2555_v12, %v741_v39  ;;  %v1753_v16 = vsel %vm349_vm0, 1.0, %v3202_v0  ;;  %v1114_v10 = vadd.f32 %v1846_v4, %v890_v56  ;;  %vm1022_vm14 = vcmp.eq.s32.totalorder %v2555_v12, %v968_v59 }
 0x16a   : > { %552 = vperm.xlu1 %2122, %v2574_v28   ;;  %v1817_v27 = vsel %vm797_vm1, 1.0, %v3202_v0  ;;  %v669_v3 = vadd.f32 %v1785_v36, %v1753_v16  ;;  %v3208_v16 = vld [vmem:[#allocation5_spill] sm:$0xff] }
 0x16c   : > { %v893_v15 = vadd.f32 %v1817_v27, %v669_v3  ;;  %v977_v54 = vpop.permute.xlu0 %976  ;;  %v3209_v27 = vld [vmem:[#allocation9_spill] sm:$0xff] }
 0x16d   : > { %v959_v30 = vpop.permute.xlu1 %958  ;;  %vm1025_vm1 = vcmp.eq.s32.totalorder %v2555_v12, %v977_v54 }
 0x16e   : > { %vm1019_vm4 = vcmp.eq.s32.totalorder %v2555_v12, %v959_v30  ;;  %2123 = vset.pattern.permute.xlu1 %v3201_v61  ;;  %v1117_v32 = vadd.f32 %v1849_v8, %v893_v15  ;;  %v1853_v25 = vsel %vm1025_vm1, 1.0, %v3202_v0 }
 0x16f   : > { %v1847_v49 = vsel %vm1019_vm4, 1.0, %v3202_v0  ;;  %767 = vperm.xlu1 %2123, %v2564_v23   ;;  %vm355_vm4 = vcmp.eq.s32.totalorder %v2555_v12, %v3208_v16 }
 0x170   : > { %v1115_v43 = vadd.f32 %v1847_v49, %v891_v35  ;;  %v1850_v35 = vsel %vm1022_vm14, 1.0, %v3202_v0 }
 0x171   : > { %v962_v1 = vpop.permute.xlu1 %961 }
 0x172   : > { %vm1020_vm5 = vcmp.eq.s32.totalorder %v2555_v12, %v962_v1  ;;  %v1138_v48 = vpack.c.bf16 %v1115_v43, %v1114_v10 }
 0x173   : > { %v1848_v61 = vsel %vm1020_vm5, 1.0, %v3202_v0  ;;  %773 = vperm.xlu1 %2123, %v2142_v20   ;;  %vm803_vm5 = vcmp.eq.s32.totalorder %v2555_v12, %v3209_v27 }
 0x174   : > { %v1116_v51 = vadd.f32 %v1848_v61, %v892_v38  ;;  %1965 = vmatprep.mubr.bf16.mxu0 %v1138_v48  ;;  %v1823_v5 = vsel %vm803_vm5, 1.0, %v3202_v0  ;;  %v980_v61 = vpop.permute.xlu0 %979 }
 0x176   : > { %v296_v23 = vpop.permute.xlu1 %295  ;;  %v1139_v24 = vpack.c.bf16 %v1117_v32, %v1116_v51 }
 0x177   : > { %776 = vperm.xlu1 %2123, %v2574_v28   ;;  %v1819_v28 = vsel %vm799_vm7, 1.0, %v3202_v0  ;;  %vm350_vm10 = vcmp.eq.s32.totalorder %v2555_v12, %v296_v23 }
 0x178   : > { %1966 = vmatmul.mubr.bf16.gmra.mxu0 %v1139_v24  ;;  %v1754_v34 = vsel %vm350_vm10, 1.0, %v3202_v0 }
 0x17b   : > { %2125 = vset.pattern.permute.xlu1 %v3205_v63  ;;  %v520_v14 = vpop.permute.xlu1 %519 }
 0x17c   : > { %994 = vperm.xlu1 %2125, %v2143_v26   ;;  %vm574_vm9 = vcmp.eq.s32.totalorder %v2555_v12, %v520_v14 }
 0x17d   : > { %v1786_v9 = vsel %vm574_vm9, 1.0, %v3202_v0 }
 0x17e   : > { %v670_v19 = vadd.f32 %v1786_v9, %v1754_v34 }
 0x17f   : > { %v523_v46 = vpop.permute.xlu1 %522 }
 0x180   : > { %vm575_vm8 = vcmp.eq.s32.totalorder %v2555_v12, %v523_v46  ;;  %997 = vperm.xlu1 %2125, %v2142_v20  }
 0x181   : > { %v1787_v60 = vsel %vm575_vm8, 1.0, %v3202_v0 }
 0x182   : > { %v671_v63 = vadd.f32 %v1787_v60, %v1755_v44 }
 0x184   : > { %v305_v45 = vpop.permute.xlu1 %304  ;;  %v895_v17 = vadd.f32 %v1819_v28, %v671_v63  ;;  %v989_v28 = vpop.permute.xlu0 %988 }
 0x185   : > { %vm353_vm13 = vcmp.eq.s32.totalorder %v2555_v12, %v305_v45 }
 0x186   : > { %v1757_v13 = vsel %vm353_vm13, 1.0, %v3202_v0 }
 0x189   : > { %v529_v53 = vpop.permute.xlu1 %528 }
 0x18a   : > { %vm577_vm12 = vcmp.eq.s32.totalorder %v2555_v12, %v529_v53 }
 0x18b   : > { %v1789_v62 = vsel %vm577_vm12, 1.0, %v3202_v0  ;;  %vm1026_vm12 = vcmp.eq.s32.totalorder %v2555_v12, %v980_v61 }
 0x18c   : > { %v673_v2 = vadd.f32 %v1789_v62, %v1757_v13  ;;  %v1854_v14 = vsel %vm1026_vm12, 1.0, %v3202_v0  ;;  %v3211_v13 = vld [vmem:[#allocation6_spill] sm:$0xff] }
 0x18e   : > { %v744_v6 = vpop.permute.xlu1 %743 }
 0x18f   : > { %vm798_vm11 = vcmp.eq.s32.totalorder %v2555_v12, %v744_v6 }
 0x190   : > { %v1818_v11 = vsel %vm798_vm11, 1.0, %v3202_v0 }
 0x191   : > { %v894_v33 = vadd.f32 %v1818_v11, %v670_v19 }
 0x192   : > { %v750_v58 = vpop.permute.xlu1 %749 }
 0x193   : > { %vm800_vm0 = vcmp.eq.s32.totalorder %v2555_v12, %v750_v58  ;;  %v1118_v18 = vadd.f32 %v1850_v35, %v894_v33  ;;  %v3210_v58 = vld [vmem:[#allocation7_spill] sm:$0xff] }
 0x194   : > { %v1820_v42 = vsel %vm800_vm0, 1.0, %v3202_v0  ;;  %vm1029_vm0 = vcmp.eq.s32.totalorder %v2555_v12, %v989_v28 }
 0x195   : > { %v896_v39 = vadd.f32 %v1820_v42, %v2631_v29  ;;  %v1759_v29 = vsel %vm355_vm4, 1.0, %v3202_v0 }
 0x196   : > { %v753_v37 = vpop.permute.xlu1 %752 }
 0x197   : > { %vm801_vm15 = vcmp.eq.s32.totalorder %v2555_v12, %v753_v37  ;;  %v1857_v37 = vsel %vm1029_vm0, 1.0, %v3202_v0 }
 0x198   : > { %v1821_v21 = vsel %vm801_vm15, 1.0, %v3202_v0 }
 0x199   : > { %v897_v57 = vadd.f32 %v1821_v21, %v673_v2  ;;  %v3212_v21 = vld [vmem:[#allocation10_spill] sm:$0xff] }
 0x19b   : > { %v971_v31 = vpop.permute.xlu1 %970  ;;  %v1121_v40 = vadd.f32 %v1853_v25, %v897_v57 }
 0x19c   : > { %vm1023_vm2 = vcmp.eq.s32.totalorder %v2555_v12, %v971_v31 }
 0x19d   : > { %v1851_v41 = vsel %vm1023_vm2, 1.0, %v3202_v0  ;;  %vm359_vm2 = vcmp.eq.s32.totalorder %v2555_v12, %v3211_v13 }
 0x19e   : > { %v1119_v22 = vadd.f32 %v1851_v41, %v895_v17  ;;  %v1763_v31 = vsel %vm359_vm2, 1.0, %v3202_v0 }
 0x19f   : > { %v974_v55 = vpop.permute.xlu1 %973 }
 0x1a0   : > { %vm1024_vm3 = vcmp.eq.s32.totalorder %v2555_v12, %v974_v55  ;;  %v1140_v52 = vpack.c.bf16 %v1119_v22, %v1118_v18 }
 0x1a1   : > { %v1852_v50 = vsel %vm1024_vm3, 1.0, %v3202_v0  ;;  %vm807_vm3 = vcmp.eq.s32.totalorder %v2555_v12, %v3212_v21 }
 0x1a2   : > { %v1120_v36 = vadd.f32 %v1852_v50, %v896_v39  ;;  %1969 = vmatprep.mubr.bf16.mxu0 %v1140_v52  ;;  %v1827_v41 = vsel %vm807_vm3, 1.0, %v3202_v0 }
 0x1a4   : > { %v308_v47 = vpop.permute.xlu1 %307  ;;  %v1141_v7 = vpack.c.bf16 %v1121_v40, %v1120_v36 }
 0x1a5   : > { %vm354_vm8 = vcmp.eq.s32.totalorder %v2555_v12, %v308_v47 }
 0x1a6   : > { %1970 = vmatmul.mubr.bf16.gmra.mxu0 %v1141_v7  ;;  %v1758_v48 = vsel %vm354_vm8, 1.0, %v3202_v0 }
 0x1a9   : > { %v532_v56 = vpop.permute.xlu1 %531 }
 0x1aa   : > { %vm578_vm7 = vcmp.eq.s32.totalorder %v2555_v12, %v532_v56  ;;  %v992_v56 = vpop.permute.xlu0 %991 }
 0x1ab   : > { %v1790_v1 = vsel %vm578_vm7, 1.0, %v3202_v0 }
 0x1ac   : > { %v674_v32 = vadd.f32 %v1790_v1, %v1758_v48 }
 0x1ad   : > { %v535_v4 = vpop.permute.xlu1 %534 }
 0x1ae   : > { %vm579_vm6 = vcmp.eq.s32.totalorder %v2555_v12, %v535_v4 }
 0x1af   : > { %v1791_v30 = vsel %vm579_vm6, 1.0, %v3202_v0 }
 0x1b0   : > { %v675_v3 = vadd.f32 %v1791_v30, %v1759_v29 }
 0x1b2   : > { %v317_v49 = vpop.permute.xlu1 %316  ;;  %v899_v10 = vadd.f32 %v1823_v5, %v675_v3 }
 0x1b3   : > { %vm357_vm11 = vcmp.eq.s32.totalorder %v2555_v12, %v317_v49 }
 0x1b4   : > { %v1761_v24 = vsel %vm357_vm11, 1.0, %v3202_v0  ;;  %vm1030_vm11 = vcmp.eq.s32.totalorder %v2555_v12, %v992_v56 }
 0x1b7   : > { %v541_v15 = vpop.permute.xlu1 %540 }
 0x1b8   : > { %vm581_vm10 = vcmp.eq.s32.totalorder %v2555_v12, %v541_v15  ;;  %v1001_v15 = vpop.permute.xlu0 %1000 }
 0x1b9   : > { %v1793_v51 = vsel %vm581_vm10, 1.0, %v3202_v0 }
 0x1ba   : > { %v677_v44 = vadd.f32 %v1793_v51, %v1761_v24  ;;  %v1858_v51 = vsel %vm1030_vm11, 1.0, %v3202_v0 }
 0x1bc   : > { %v756_v43 = vpop.permute.xlu1 %755 }
 0x1bd   : > { %vm802_vm9 = vcmp.eq.s32.totalorder %v2555_v12, %v756_v43 }
 0x1be   : > { %v1822_v20 = vsel %vm802_vm9, 1.0, %v3202_v0 }
 0x1bf   : > { %v898_v23 = vadd.f32 %v1822_v20, %v674_v32 }
 0x1c0   : > { %v762_v8 = vpop.permute.xlu1 %761 }
 0x1c1   : > { %vm804_vm14 = vcmp.eq.s32.totalorder %v2555_v12, %v762_v8  ;;  %v1122_v45 = vadd.f32 %v1854_v14, %v898_v23 }
 0x1c2   : > { %v1824_v60 = vsel %vm804_vm14, 1.0, %v3202_v0  ;;  %vm1033_vm14 = vcmp.eq.s32.totalorder %v2555_v12, %v1001_v15 }
 0x1c3   : > { %v900_v9 = vadd.f32 %v1824_v60, %v3210_v58 }
 0x1c4   : > { %v765_v38 = vpop.permute.xlu1 %764 }
 0x1c5   : > { %vm805_vm13 = vcmp.eq.s32.totalorder %v2555_v12, %v765_v38 }
 0x1c6   : > { %v1825_v26 = vsel %vm805_vm13, 1.0, %v3202_v0 }
 0x1c7   : > { %v901_v17 = vadd.f32 %v1825_v26, %v677_v44 }
 0x1c9   : > { %v983_v46 = vpop.permute.xlu1 %982  ;;  %v1125_v11 = vadd.f32 %v1857_v37, %v901_v17 }
 0x1ca   : > { %vm1027_vm15 = vcmp.eq.s32.totalorder %v2555_v12, %v983_v46 }
 0x1cb   : > { %v1855_v63 = vsel %vm1027_vm15, 1.0, %v3202_v0 }
 0x1cc   : > { %v1123_v53 = vadd.f32 %v1855_v63, %v899_v10  ;;  %v3213_v63 = vld [vmem:[#allocation8_spill] sm:$0xff] }
 0x1cd   : > { %v986_v6 = vpop.permute.xlu1 %985 }
 0x1ce   : > { %vm1028_vm1 = vcmp.eq.s32.totalorder %v2555_v12, %v986_v6  ;;  %v1142_v59 = vpack.c.bf16 %v1123_v53, %v1122_v45  ;;  %v1861_v53 = vsel %vm1033_vm14, 1.0, %v3202_v0 }
 0x1cf   : > { %v1856_v34 = vsel %vm1028_vm1, 1.0, %v3202_v0 }
 0x1d0   : > { %v1124_v19 = vadd.f32 %v1856_v34, %v900_v9  ;;  %1973 = vmatprep.mubr.bf16.mxu0 %v1142_v59 }
 0x1d2   : > { %v320_v62 = vpop.permute.xlu1 %319  ;;  %v1143_v54 = vpack.c.bf16 %v1125_v11, %v1124_v19 }
 0x1d3   : > { %vm358_vm6 = vcmp.eq.s32.totalorder %v2555_v12, %v320_v62 }
 0x1d4   : > { %1974 = vmatmul.mubr.bf16.gmra.mxu0 %v1143_v54  ;;  %v1762_v29 = vsel %vm358_vm6, 1.0, %v3202_v0 }
 0x1d7   : > { %v544_v33 = vpop.permute.xlu1 %543 }
 0x1d8   : > { %vm582_vm5 = vcmp.eq.s32.totalorder %v2555_v12, %v544_v33 }
 0x1d9   : > { %v1794_v16 = vsel %vm582_vm5, 1.0, %v3202_v0 }
 0x1da   : > { %v678_v5 = vadd.f32 %v1794_v16, %v1762_v29 }
 0x1db   : > { %v547_v35 = vpop.permute.xlu1 %546 }
 0x1dc   : > { %vm583_vm4 = vcmp.eq.s32.totalorder %v2555_v12, %v547_v35 }
 0x1dd   : > { %v1795_v2 = vsel %vm583_vm4, 1.0, %v3202_v0 }
 0x1de   : > { %v679_v42 = vadd.f32 %v1795_v2, %v1763_v31 }
 0x1e0   : > { %v329_v18 = vpop.permute.xlu1 %328  ;;  %v903_v57 = vadd.f32 %v1827_v41, %v679_v42 }
 0x1e1   : > { %vm361_vm9 = vcmp.eq.s32.totalorder %v2555_v12, %v329_v18 }
 0x1e2   : > { %v1765_v1 = vsel %vm361_vm9, 1.0, %v3202_v0 }
 0x1e5   : > { %v553_v22 = vpop.permute.xlu1 %552 }
 0x1e6   : > { %vm585_vm8 = vcmp.eq.s32.totalorder %v2555_v12, %v553_v22 }
 0x1e7   : > { %v1951_v25 = vpop.f32.mrf.mxu0  ;;  %v1797_v49 = vsel %vm585_vm8, 1.0, %v3202_v0 }
 0x1e8   : > { %v681_v32 = vadd.f32 %v1797_v49, %v1765_v1 }
 0x1e9   : > { %v1244_v55 = vpop.f32.mrf.mxu0 }
 0x1ea   : > { %v768_v39 = vpop.permute.xlu1 %767 }
 0x1eb   : > { %v1952_v52 = vpop.f32.mrf.mxu0  ;;  %vm806_vm7 = vcmp.eq.s32.totalorder %v2555_v12, %v768_v39 }
 0x1ec   : > { %v1372_v47 = vpack.c.bf16 %v1952_v52, %v1951_v25  ;;  %v1826_v30 = vsel %vm806_vm7, 1.0, %v3202_v0 }
 0x1ed   : > { %v1247_v50 = vpop.f32.mrf.mxu0  ;;  %v902_v43 = vadd.f32 %v1826_v30, %v678_v5 }
 0x1ee   : > { %v774_v40 = vpop.permute.xlu1 %773  ;;  %v1371_v36 = vpack.c.bf16 %v1247_v50, %v1244_v55 }
 0x1ef   : > { %v1955_v7 = vpop.f32.mrf.mxu0  ;;  %vm808_vm12 = vcmp.eq.s32.totalorder %v2555_v12, %v774_v40  ;;  %v1126_v26 = vadd.f32 %v1858_v51, %v902_v43 }
 0x1f0   : > { %1997 = vmatprep.mubr.bf16.mxu1 %v1371_v36  ;;  %v1828_v23 = vsel %vm808_vm12, 1.0, %v3202_v0 }
 0x1f1   : > { %v1260_v4 = vpop.f32.mrf.mxu0  ;;  %1998 = vmatmul.mubr.bf16.vlgmr.msra.gmra.mxu1 %v1372_v47  ;;  %v904_v45 = vadd.f32 %v1828_v23, %v3213_v63 }
 0x1f2   : > { %v777_v27 = vpop.permute.xlu1 %776 }
 0x1f3   : > { %v1956_v3 = vpop.f32.mrf.mxu0  ;;  %vm809_vm10 = vcmp.eq.s32.totalorder %v2555_v12, %v777_v27 }
 0x1f4   : > { %v1829_v38 = vsel %vm809_vm10, 1.0, %v3202_v0  ;;  %v1374_v48 = vpack.c.bf16 %v1956_v3, %v1955_v7  ;;  %v3061_v7 = vld [vmem:[%s3183_s3] ss:$0 sm:$0xff] }
 0x1f5   : > { %v1263_v10 = vpop.f32.mrf.mxu0  ;;  %v905_v46 = vadd.f32 %v1829_v38, %v681_v32 }
 0x1f6   : > { %v1373_v8 = vpack.c.bf16 %v1263_v10, %v1260_v4 }
 0x1f7   : > { %v995_v61 = vpop.permute.xlu1 %994  ;;  %v1959_v20 = vpop.f32.mrf.mxu0  ;;  %v1129_v9 = vadd.f32 %v1861_v53, %v905_v46 }
 0x1f8   : > { %vm1031_vm13 = vcmp.eq.s32.totalorder %v2555_v12, %v995_v61  ;;  %2001 = vmatprep.mubr.bf16.mxu1 %v1373_v8 }
 0x1f9   : > { %v1859_v24 = vsel %vm1031_vm13, 1.0, %v3202_v0  ;;  %v1276_v14 = vpop.f32.mrf.mxu0  ;;  %2002 = vmatmul.mubr.bf16.gmra.mxu1 %v1374_v48 }
 0x1fa   : > { %v1127_v44 = vadd.f32 %v1859_v24, %v903_v57 }
 0x1fb   : > { %v998_v28 = vpop.permute.xlu1 %997  ;;  %v1960_v60 = vpop.f32.mrf.mxu0 }
 0x1fc   : > { %vm1032_vm15 = vcmp.eq.s32.totalorder %v2555_v12, %v998_v28  ;;  %v1144_v17 = vpack.c.bf16 %v1127_v44, %v1126_v26  ;;  %v1376_v34 = vpack.c.bf16 %v1960_v60, %v1959_v20 }
 0x1fd   : > { %v1860_v6 = vsel %vm1032_vm15, 1.0, %v3202_v0  ;;  %v1279_v58 = vpop.f32.mrf.mxu0 }
 0x1fe   : > { %v1128_v59 = vadd.f32 %v1860_v6, %v904_v45  ;;  %v1375_v37 = vpack.c.bf16 %v1279_v58, %v1276_v14  ;;  %1977 = vmatprep.mubr.bf16.mxu0 %v1144_v17 }
 0x200   : > { %2005 = vmatprep.mubr.bf16.mxu1 %v1375_v37  ;;  %v1145_v11 = vpack.c.bf16 %v1129_v9, %v1128_v59 }
 0x201   : > { %2006 = vmatmul.mubr.bf16.gmra.mxu1 %v1376_v34 }
 0x202   : > { %1978 = vmatmul.mubr.bf16.gmra.mxu0 %v1145_v11 }
 0x20a   : > { %v1963_v19 = vpop.f32.mrf.mxu0 }
 0x20c   : > { %v1292_v62 = vpop.f32.mrf.mxu0 }
 0x20e   : > { %v1964_v54 = vpop.f32.mrf.mxu0 }
 0x20f   : > { %v1378_v13 = vpack.c.bf16 %v1964_v54, %v1963_v19 }
 0x210   : > { %v1295_v33 = vpop.f32.mrf.mxu0 }
 0x211   : > { %v1377_v12 = vpack.c.bf16 %v1295_v33, %v1292_v62 }
 0x213   : > { %2009 = vmatprep.mubr.bf16.mxu1 %v1377_v12 }
 0x214   : > { %2010 = vmatmul.mubr.bf16.gmra.mxu1 %v1378_v13 }
 0x238   : > { %v1967_v35 = vpop.f32.mrf.mxu0 }
 0x23a   : > { %v1308_v0 = vpop.f32.mrf.mxu0 }
 0x23c   : > { %v1968_v21 = vpop.f32.mrf.mxu0 }
 0x23d   : > { %v1380_v42 = vpack.c.bf16 %v1968_v21, %v1967_v35 }
 0x23e   : > { %v1311_v31 = vpop.f32.mrf.mxu0 }
 0x23f   : > { %v1379_v2 = vpack.c.bf16 %v1311_v31, %v1308_v0 }
 0x241   : > { %2013 = vmatprep.mubr.bf16.mxu1 %v1379_v2 }
 0x242   : > { %2014 = vmatmul.mubr.bf16.gmra.mxu1 %v1380_v42 }
 0x266   : > { %v1971_v41 = vpop.f32.mrf.mxu0 }
 0x268   : > { %v1324_v18 = vpop.f32.mrf.mxu0 }
 0x26a   : > { %v1972_v57 = vpop.f32.mrf.mxu0 }
 0x26b   : > { %v1382_v55 = vpack.c.bf16 %v1972_v57, %v1971_v41 }
 0x26c   : > { %v1327_v22 = vpop.f32.mrf.mxu0 }
 0x26d   : > { %v1381_v25 = vpack.c.bf16 %v1327_v22, %v1324_v18 }
 0x26f   : > { %2017 = vmatprep.mubr.bf16.mxu1 %v1381_v25 }
 0x270   : > { %2018 = vmatmul.mubr.bf16.gmra.mxu1 %v1382_v55 }
 0x294   : > { %v1975_v39 = vpop.f32.mrf.mxu0 }
 0x296   : > { %v1340_v52 = vpop.f32.mrf.mxu0 }
 0x298   : > { %v1976_v50 = vpop.f32.mrf.mxu0 }
 0x299   : > { %v1384_v47 = vpack.c.bf16 %v1976_v50, %v1975_v39 }
 0x29a   : > { %v1343_v40 = vpop.f32.mrf.mxu0 }
 0x29b   : > { %v1383_v36 = vpack.c.bf16 %v1343_v40, %v1340_v52 }
 0x29d   : > { %2021 = vmatprep.mubr.bf16.mxu1 %v1383_v36 }
 0x29e   : > { %2022 = vmatmul.mubr.bf16.gmra.mxu1 %v1384_v47 }
 0x2b1   : > { %v1999_v56 = vpop.f32.mrf.mxu1 }
 0x2b2   : > { %v1501_v16 = vadd.f32 %v1999_v56, %v3061_v7 }
 0x2b3   : > { %v1492_v4 = vpop.f32.mrf.mxu1 }
 0x2b4   : > { %1621 = vst [vmem:[%s3064_s9 + $0x10] sm:$0xff] %v1501_v16  ;;  %v1493_v27 = vadd.f32 %v3061_v7, %v1492_v4 }
 0x2b5   : > { %v2000_v29 = vpop.f32.mrf.mxu1 }
 0x2b6   : > { %1619 = vst [vmem:[%s3064_s9] sm:$0xff] %v1493_v27  ;;  %v1504_v30 = vadd.f32 %v2000_v29, %v3061_v7 }
 0x2b7   : > { %v1495_v3 = vpop.f32.mrf.mxu1 }
 0x2b8   : > { %1622 = vst [vmem:[%s3064_s9 + $0x18] sm:$0xff] %v1504_v30  ;;  %v1496_v5 = vadd.f32 %v3061_v7, %v1495_v3 }
 0x2b9   : > { %v2003_v49 = vpop.f32.mrf.mxu1 }
 0x2ba   : > { %1620 = vst [vmem:[%s3064_s9 + $0x8] sm:$0xff] %v1496_v5  ;;  %v1517_v10 = vadd.f32 %v2003_v49, %v3061_v7 }
 0x2bb   : > { %v1508_v15 = vpop.f32.mrf.mxu1 }
 0x2bc   : > { %1625 = vst [vmem:[%s3064_s9 + $0x30] sm:$0xff] %v1517_v10  ;;  %v1509_v43 = vadd.f32 %v3061_v7, %v1508_v15 }
 0x2bd   : > { %v2004_v8 = vpop.f32.mrf.mxu1 }
 0x2be   : > { %1623 = vst [vmem:[%s3064_s9 + $0x20] sm:$0xff] %v1509_v43  ;;  %v1520_v1 = vadd.f32 %v2004_v8, %v3061_v7 }
 0x2bf   : > { %v1511_v38 = vpop.f32.mrf.mxu1 }
 0x2c0   : > { %1626 = vst [vmem:[%s3064_s9 + $0x38] sm:$0xff] %v1520_v1  ;;  %v1512_v48 = vadd.f32 %v3061_v7, %v1511_v38 }
 0x2c1   : > { %v2007_v61 = vpop.f32.mrf.mxu1 }
 0x2c2   : > { %1624 = vst [vmem:[%s3064_s9 + $0x28] sm:$0xff] %v1512_v48  ;;  %v1533_v20 = vadd.f32 %v2007_v61, %v3061_v7  ;;  %v1979_v32 = vpop.f32.mrf.mxu0 }
 0x2c3   : > { %v1524_v51 = vpop.f32.mrf.mxu1 }
 0x2c4   : > { %1629 = vst [vmem:[%s3064_s9 + $0x50] sm:$0xff] %v1533_v20  ;;  %v1525_v23 = vadd.f32 %v3061_v7, %v1524_v51  ;;  %v1356_v24 = vpop.f32.mrf.mxu0 }
 0x2c5   : > { %v2008_v14 = vpop.f32.mrf.mxu1 }
 0x2c6   : > { %1627 = vst [vmem:[%s3064_s9 + $0x40] sm:$0xff] %v1525_v23  ;;  %v1536_v26 = vadd.f32 %v2008_v14, %v3061_v7  ;;  %v1980_v46 = vpop.f32.mrf.mxu0 }
 0x2c7   : > { %v1527_v44 = vpop.f32.mrf.mxu1  ;;  %v1386_v45 = vpack.c.bf16 %v1980_v46, %v1979_v32 }
 0x2c8   : > { %1630 = vst [vmem:[%s3064_s9 + $0x58] sm:$0xff] %v1536_v26  ;;  %v1528_v28 = vadd.f32 %v3061_v7, %v1527_v44  ;;  %v1359_v60 = vpop.f32.mrf.mxu0 }
 0x2c9   : > { %v1385_v63 = vpack.c.bf16 %v1359_v60, %v1356_v24 }
 0x2ca   : > { %1628 = vst [vmem:[%s3064_s9 + $0x48] sm:$0xff] %v1528_v28 }
 0x2cb   : > { %2025 = vmatprep.mubr.bf16.mxu1 %v1385_v63 }
 0x2cc   : > { %2026 = vmatmul.mubr.bf16.gmra.mxu1 %v1386_v45 }
 0x2d4   : > { %v2011_v17 = vpop.f32.mrf.mxu1 }
 0x2d5   : > { %v1549_v53 = vadd.f32 %v2011_v17, %v3061_v7 }
 0x2d6   : > { %v1540_v6 = vpop.f32.mrf.mxu1 }
 0x2d7   : > { %1633 = vst [vmem:[%s3064_s9 + $0x70] sm:$0xff] %v1549_v53  ;;  %v1541_v58 = vadd.f32 %v3061_v7, %v1540_v6 }
 0x2d8   : > { %v2012_v9 = vpop.f32.mrf.mxu1 }
 0x2d9   : > { %1631 = vst [vmem:[%s3064_s9 + $0x60] sm:$0xff] %v1541_v58  ;;  %v1552_v59 = vadd.f32 %v2012_v9, %v3061_v7 }
 0x2da   : > { %v1543_v37 = vpop.f32.mrf.mxu1 }
 0x2db   : > { %1634 = vst [vmem:[%s3064_s9 + $0x78] sm:$0xff] %v1552_v59  ;;  %v1544_v34 = vadd.f32 %v3061_v7, %v1543_v37 }
 0x2dd   : > { %1632 = vst [vmem:[%s3064_s9 + $0x68] sm:$0xff] %v1544_v34 }
 0x302   : > { %v2015_v11 = vpop.f32.mrf.mxu1 }
 0x303   : > { %v1565_v19 = vadd.f32 %v2015_v11, %v3061_v7 }
 0x304   : > { %v1556_v62 = vpop.f32.mrf.mxu1 }
 0x305   : > { %1637 = vst [vmem:[%s3064_s9 + $0x90] sm:$0xff] %v1565_v19  ;;  %v1557_v54 = vadd.f32 %v3061_v7, %v1556_v62 }
 0x306   : > { %v2016_v33 = vpop.f32.mrf.mxu1 }
 0x307   : > { %1635 = vst [vmem:[%s3064_s9 + $0x80] sm:$0xff] %v1557_v54  ;;  %v1568_v12 = vadd.f32 %v2016_v33, %v3061_v7 }
 0x308   : > { %v1559_v13 = vpop.f32.mrf.mxu1 }
 0x309   : > { %1638 = vst [vmem:[%s3064_s9 + $0x98] sm:$0xff] %v1568_v12  ;;  %v1560_v35 = vadd.f32 %v3061_v7, %v1559_v13 }
 0x30b   : > { %1636 = vst [vmem:[%s3064_s9 + $0x88] sm:$0xff] %v1560_v35 }
 0x330   : > { %v2019_v0 = vpop.f32.mrf.mxu1 }
 0x331   : > { %v1581_v21 = vadd.f32 %v2019_v0, %v3061_v7 }
 0x332   : > { %v1572_v31 = vpop.f32.mrf.mxu1 }
 0x333   : > { %1641 = vst [vmem:[%s3064_s9 + $0xb0] sm:$0xff] %v1581_v21  ;;  %v1573_v2 = vadd.f32 %v3061_v7, %v1572_v31 }
 0x334   : > { %v2020_v42 = vpop.f32.mrf.mxu1 }
 0x335   : > { %1639 = vst [vmem:[%s3064_s9 + $0xa0] sm:$0xff] %v1573_v2  ;;  %v1584_v41 = vadd.f32 %v2020_v42, %v3061_v7 }
 0x336   : > { %v1575_v18 = vpop.f32.mrf.mxu1 }
 0x337   : > { %1642 = vst [vmem:[%s3064_s9 + $0xb8] sm:$0xff] %v1584_v41  ;;  %v1576_v57 = vadd.f32 %v3061_v7, %v1575_v18 }
 0x339   : > { %1640 = vst [vmem:[%s3064_s9 + $0xa8] sm:$0xff] %v1576_v57 }
 0x35e   : > { %v2023_v22 = vpop.f32.mrf.mxu1 }
 0x35f   : > { %v1597_v25 = vadd.f32 %v2023_v22, %v3061_v7 }
 0x360   : > { %v1588_v55 = vpop.f32.mrf.mxu1 }
 0x361   : > { %1645 = vst [vmem:[%s3064_s9 + $0xd0] sm:$0xff] %v1597_v25  ;;  %v1589_v39 = vadd.f32 %v3061_v7, %v1588_v55 }
 0x362   : > { %v2024_v52 = vpop.f32.mrf.mxu1 }
 0x363   : > { %1643 = vst [vmem:[%s3064_s9 + $0xc0] sm:$0xff] %v1589_v39  ;;  %v1600_v50 = vadd.f32 %v2024_v52, %v3061_v7 }
 0x364   : > { %v1591_v40 = vpop.f32.mrf.mxu1 }
 0x365   : > { %1646 = vst [vmem:[%s3064_s9 + $0xd8] sm:$0xff] %v1600_v50  ;;  %v1592_v36 = vadd.f32 %v3061_v7, %v1591_v40 }
 0x367   : > { %1644 = vst [vmem:[%s3064_s9 + $0xc8] sm:$0xff] %v1592_v36 }
 0x38c   : > { %v2027_v47 = vpop.f32.mrf.mxu1 }
 0x38d   : > { %v1613_v56 = vadd.f32 %v2027_v47, %v3061_v7 }
 0x38e   : > { %v1604_v16 = vpop.f32.mrf.mxu1 }
 0x38f   : > { %1649 = vst [vmem:[%s3064_s9 + $0xf0] sm:$0xff] %v1613_v56  ;;  %v1605_v4 = vadd.f32 %v3061_v7, %v1604_v16 }
 0x390   : > { %v2028_v27 = vpop.f32.mrf.mxu1 }
 0x391   : > { %1647 = vst [vmem:[%s3064_s9 + $0xe0] sm:$0xff] %v1605_v4  ;;  %v1616_v29 = vadd.f32 %v2028_v27, %v3061_v7 }
 0x392   : > { %v1607_v30 = vpop.f32.mrf.mxu1 }
 0x393   : > { %1650 = vst [vmem:[%s3064_s9 + $0xf8] sm:$0xff] %v1616_v29  ;;  %v1608_v3 = vadd.f32 %v3061_v7, %v1607_v30 }
 0x395   : > { %1648 = vst [vmem:[%s3064_s9 + $0xe8] sm:$0xff] %v1608_v3 }
 0x396   : > { %2157 = shalt.err (!%p2154_p3)
}
 0x397   : > { %s2158_s28 = scalar_lea.hbm %s3131_s14, 4096  ;;  %s2162_s5 = scalar_lea.hbm %s3184_s4, 8192 }
 0x398   : > { %p2159_p4 = scmp.ne.s32.totalorder %s3131_s14, %s2158_s28  ;;  %p2163_p9 = scmp.lt.s32.totalorder %s3131_s14, %s3184_s4 }
 0x399   : > { %p2164_p10 = scmp.lt.s32.totalorder %s2162_s5, %s2158_s28 }
 0x39a   : > { %p2160_p7 = pnand %p2159_p4, %p2277_p5 }
 0x39b   : > { %p2165_p11 = por %p2164_p10, %p2163_p9 }
 0x39c   : > { %p2161_p8 = pneg %p2160_p7 }
 0x39e   : > { %p2166_p12 = pnand %p2165_p11, %p2161_p8 }
 0x3a0   : > { %2169 = shalt.err (!%p2166_p12)
}
 0x3a1   : > { %s2212_s8 = smov 128   ;;  %s2213_s9 = smov 8  }
 0x3a2   : > { %2029 = dma.vmem_to_hbm [thread:$0]  (%p2277_p5), %s3133_s11, 4096, %s3131_s14, %s3140_s19, %s2212_s8, %s2212_s8, %s2213_s9  }
 0x3a3 PF: > { %p2035_p13 = scmp.ge.s32.totalorder %s2204_s18, 2  ;;  %s1680_s10 = sand.u32 1, %s2192_s15  }
 0x3a4   : > { %s1681_s12 = scalar_lea.sflag [#allocation3], %s1680_s10 }
 0x3a5   : > { %p2032_p0 = pnand %p2035_p13, %p2281_p6 }
 0x3a7   : > { %p2033_p1 = pneg %p2032_p0 }
 0x3a9   : > { %2187 = dma.done.wait (%p2033_p1), %s1681_s12, 4096  }
 0x3aa   : > { %2189 = vsyncadd (%p2033_p1), %s1681_s12, 4294963200  ;;  %p14_p2 = scmp.ge.s32.totalorder %s2264_s21, 4   ;;  %s3214_s15 = smov %s2196_s16 }
 0x3ab   : > { %s3215_s16 = smov %s2200_s17  ;;  %s3216_s17 = smov %s2275_s24 }
 0x3ac   : > { %s3217_s18 = smov %s2264_s21  ;;  %16 = sbr.rel (!%p14_p2) target bundleno = 3 (0x3), region = 71 }
 0x3b1   :  { %1686 = vsyncpa [#allocation3], 1 }
 0x3b2   :  { %1688 = vsyncpa [#allocation3 + $0x1], 1 }

</bundles_post_ra>
